<compile_context>
chip_gen: v6e
topology: v6e:2x2x1
jax: 0.10.0
libtpu: 0.0.40
codegen_flags: <defaults>
</compile_context>

<pallas_src>
import jax
import jax.numpy as jnp
from jax import lax
from jax.experimental import pallas as pl
from jax.experimental.pallas import tpu as pltpu

N_EMBED = 384
N_HEADS = 6
HEAD_SIZE = N_EMBED // N_HEADS  # 64


def _mha_kernel(x_ref, wqkv_ref, wproj_ref, bp_ref, o_ref, acc_ref):
    # Grid = (B, H): program_id(0) = batch (parallel), program_id(1) = head (reduction).
    h = pl.program_id(1)

    @pl.when(h == 0)
    def _init():
        acc_ref[...] = jnp.zeros_like(acc_ref)

    x = x_ref[0]                                   # (T, C) float32
    T = x.shape[0]
    D = HEAD_SIZE

    # Fused per-head q/k/v projection: bf16 MXU operands, f32 accumulation.
    xb = x.astype(jnp.bfloat16)
    qkv = jnp.dot(xb, wqkv_ref[0], preferred_element_type=jnp.float32)   # (T, 3D) f32

    # Scale folded into q (C**-0.5 with C = n_embed, matching the reference).
    scale = jnp.float32(N_EMBED) ** jnp.float32(-0.5)
    q = (qkv[:, 0:D] * scale).astype(jnp.bfloat16)        # (T, D)
    k = qkv[:, D:2 * D].astype(jnp.bfloat16)              # (T, D)
    v = qkv[:, 2 * D:3 * D].astype(jnp.bfloat16)          # (T, D)

    # Attention scores for this head: (T, T), f32.
    scores = jnp.dot(q, k.T, preferred_element_type=jnp.float32)

    # Causal mask + numerically stable softmax (kept in f32 on VPU/EUP).
    row = lax.broadcasted_iota(jnp.int32, (T, T), 0)
    col = lax.broadcasted_iota(jnp.int32, (T, T), 1)
    scores = jnp.where(col <= row, scores, -jnp.inf)
    m = jnp.max(scores, axis=-1, keepdims=True)
    e = jnp.exp(scores - m)
    denom = jnp.sum(e, axis=-1, keepdims=True)
    wei = e * pl.reciprocal(denom, approx=True)           # (T, T) f32

    # Context for this head and its contribution to the output projection,
    # accumulated into the f32 (T, C) scratch.
    ctx = jnp.dot(wei.astype(jnp.bfloat16), v, preferred_element_type=jnp.float32)
    acc_ref[...] += jnp.dot(ctx.astype(jnp.bfloat16), wproj_ref[0],
                            preferred_element_type=jnp.float32)

    @pl.when(h == pl.num_programs(1) - 1)
    def _finish():
        # Single lane-dense (T, 384) store per batch element.
        o_ref[0] = (acc_ref[...] + bp_ref[...]).astype(o_ref.dtype)


def multi_headed_attention(x, wq, wk, wv, wproj, bproj):
    """x: (B, T, C);  wq/wk/wv/wproj: (C, C) laid out (in, out);  bproj: (C,)."""
    B, T, C = x.shape
    H, D = N_HEADS, HEAD_SIZE

    # Per-head weight slabs: column block h of wq/wk/wv -> (H, C, D); fuse q|k|v
    # along the output dim into (H, C, 3D). Row block h of wproj -> (H, D, C).
    wq_h = wq.reshape(C, H, D).transpose(1, 0, 2)
    wk_h = wk.reshape(C, H, D).transpose(1, 0, 2)
    wv_h = wv.reshape(C, H, D).transpose(1, 0, 2)
    wqkv_h = jnp.concatenate([wq_h, wk_h, wv_h], axis=-1).astype(jnp.bfloat16)
    wproj_h = wproj.reshape(H, D, C).astype(jnp.bfloat16)
    bproj2d = bproj.reshape(1, C).astype(jnp.float32)

    grid_spec = pltpu.PrefetchScalarGridSpec(
        num_scalar_prefetch=0,
        grid=(B, H),
        in_specs=[
            pl.BlockSpec((1, T, C), lambda b, h: (b, 0, 0)),       # x (per batch)
            pl.BlockSpec((1, C, 3 * D), lambda b, h: (h, 0, 0)),   # fused Wqkv (per head)
            pl.BlockSpec((1, D, C), lambda b, h: (h, 0, 0)),       # Wproj (per head)
            pl.BlockSpec((1, C), lambda b, h: (0, 0)),             # bias
        ],
        out_specs=pl.BlockSpec((1, T, C), lambda b, h: (b, 0, 0)),
        scratch_shapes=[pltpu.VMEM((T, C), jnp.float32)],          # output accumulator
    )

    return pl.pallas_call(
        _mha_kernel,
        out_shape=jax.ShapeDtypeStruct((B, T, C), x.dtype),
        grid_spec=grid_spec,
        compiler_params=pltpu.CompilerParams(
            dimension_semantics=("parallel", "arbitrary")),
    )(x, wqkv_h, wproj_h, bproj2d)


def _reference(x, wq, wk, wv, wproj, bproj):
    """Pure-JAX f32 reference matching the PyTorch forward (eval mode)."""
    B, T, C = x.shape
    H, D = N_HEADS, HEAD_SIZE
    q = x @ wq
    k = x @ wk
    v = x @ wv
    qh = q.reshape(B, T, H, D)
    kh = k.reshape(B, T, H, D)
    vh = v.reshape(B, T, H, D)
    scores = jnp.einsum('bthd,bshd->bhts', qh, kh) * (C ** -0.5)
    mask = jnp.tril(jnp.ones((T, T), dtype=bool))
    scores = jnp.where(mask[None, None], scores, -jnp.inf)
    wei = jax.nn.softmax(scores, axis=-1)
    ctx = jnp.einsum('bhts,bshd->bthd', wei, vh).reshape(B, T, H * D)
    return ctx @ wproj + bproj


if __name__ == "__main__":
    B, T, C = 2, 128, N_EMBED   # T <= block_size (256)

    key = jax.random.PRNGKey(0)
    kx, kq, kk, kv, kp, kb = jax.random.split(key, 6)

    x = jax.random.normal(kx, (B, T, C), dtype=jnp.float32)

    # PyTorch nn.Linear stores weights as (out, in); we build (in, out) directly
    # so the kernel computes x @ W. Deterministic small-scale init.
    w_scale = 1.0 / (C ** 0.5)
    wq = jax.random.normal(kq, (C, N_HEADS * HEAD_SIZE), dtype=jnp.float32) * w_scale
    wk = jax.random.normal(kk, (C, N_HEADS * HEAD_SIZE), dtype=jnp.float32) * w_scale
    wv = jax.random.normal(kv, (C, N_HEADS * HEAD_SIZE), dtype=jnp.float32) * w_scale
    wproj = jax.random.normal(kp, (N_HEADS * HEAD_SIZE, C), dtype=jnp.float32) * w_scale
    bproj = jax.random.normal(kb, (C,), dtype=jnp.float32) * 0.01

    out = multi_headed_attention(x, wq, wk, wv, wproj, bproj)
    out = jax.block_until_ready(out)

    ref = _reference(x, wq, wk, wv, wproj, bproj)
    assert out.shape == (B, T, C)
    # bf16 MXU operands (f32 accumulation) + approx reciprocal -> loosened tolerance
    # vs the pure-f32 reference, per review.
    assert jnp.allclose(out, ref, atol=1e-1, rtol=1e-1), "mismatch vs reference"

    print("KERNEL_OK")
</pallas_src>

<mosaic_0001>
module attributes {stable_mosaic.version = 11 : i64} {
  func.func @_mha_kernel(%arg0: i32, %arg1: i32, %arg2: memref<1x128x384xf32, #tpu.memory_space<vmem>>, %arg3: memref<1x384x192xbf16, #tpu.memory_space<vmem>>, %arg4: memref<1x64x384xbf16, #tpu.memory_space<vmem>>, %arg5: memref<1x384xf32, #tpu.memory_space<vmem>>, %arg6: memref<1x128x384xf32, #tpu.memory_space<vmem>>, %arg7: memref<128x384xf32, #tpu.memory_space<vmem>>) attributes {dimension_semantics = [#tpu.dimension_semantics<parallel>, #tpu.dimension_semantics<arbitrary>], iteration_bounds = array<i64: 2, 6>, scalar_prefetch = 0 : i64, scratch_operands = 1 : i64, tpu.core_type = #tpu.core_type<tc>, window_params = [{transform_indices = @transform_0, window_bounds = array<i64: 1, 128, 384>}, {transform_indices = @transform_1, window_bounds = array<i64: 1, 384, 192>}, {transform_indices = @transform_2, window_bounds = array<i64: 1, 64, 384>}, {pipeline_mode = #tpu.pipeline_mode<synchronous>, transform_indices = @transform_3, window_bounds = array<i64: 1, 384>}, {transform_indices = @transform_4, window_bounds = array<i64: 1, 128, 384>}]} {
    %c0_i32 = arith.constant 0 : i32
    %0 = arith.cmpi eq, %arg1, %c0_i32 : i32
    %1 = arith.extui %0 : i1 to i32
    %c0_i32_0 = arith.constant 0 : i32
    %2 = arith.cmpi ne, %1, %c0_i32_0 : i32
    scf.if %2 {
      %cst_22 = arith.constant 0.000000e+00 : f32
      %47 = vector.broadcast %cst_22 : f32 to vector<128x384xf32>
      %c0_23 = arith.constant 0 : index
      %c0_24 = arith.constant 0 : index
      %48 = vector.load %arg7[%c0_23, %c0_24] : memref<128x384xf32, #tpu.memory_space<vmem>>, vector<128x384xf32>
      tpu.vector_store %arg7[%c0_23, %c0_24], %47 {strides = array<i32>} : memref<128x384xf32, #tpu.memory_space<vmem>>, vector<128x384xf32>,
    } else {
    }
    %c0 = arith.constant 0 : index
    %c0_1 = arith.constant 0 : index
    %c0_2 = arith.constant 0 : index
    %3 = vector.load %arg2[%c0, %c0_1, %c0_2] : memref<1x128x384xf32, #tpu.memory_space<vmem>>, vector<1x128x384xf32>
    %4 = vector.shape_cast %3 : vector<1x128x384xf32> to vector<128x384xf32>
    %5 = arith.truncf %4 : vector<128x384xf32> to vector<128x384xbf16>
    %c0_3 = arith.constant 0 : index
    %c0_4 = arith.constant 0 : index
    %c0_5 = arith.constant 0 : index
    %6 = vector.load %arg3[%c0_3, %c0_4, %c0_5] : memref<1x384x192xbf16, #tpu.memory_space<vmem>>, vector<1x384x192xbf16>
    %7 = vector.shape_cast %6 : vector<1x384x192xbf16> to vector<384x192xbf16>
    %cst = arith.constant dense<0.000000e+00> : vector<128x192xf32>
    %8 = tpu.matmul %5, %7, %cst {dimension_numbers = #tpu.dot_dimension_numbers<[1], [0], [0], [1], [0, 0, 1, 1], [], []>} : vector<128x384xbf16>, vector<384x192xbf16>, vector<128x192xf32> -> vector<128x192xf32>
    %cst_6 = arith.constant 3.840000e+02 : f32
    %cst_7 = arith.constant -5.000000e-01 : f32
    %9 = math.powf %cst_6, %cst_7 : f32
    %10 = vector.extract_strided_slice %8 {offsets = [0, 0], sizes = [128, 64], strides = [1, 1]} : vector<128x192xf32> to vector<128x64xf32>
    %11 = vector.broadcast %9 : f32 to vector<128x64xf32>
    %12 = arith.mulf %10, %11 : vector<128x64xf32>
    %13 = arith.truncf %12 : vector<128x64xf32> to vector<128x64xbf16>
    %14 = vector.extract_strided_slice %8 {offsets = [0, 64], sizes = [128, 64], strides = [1, 1]} : vector<128x192xf32> to vector<128x64xf32>
    %15 = arith.truncf %14 : vector<128x64xf32> to vector<128x64xbf16>
    %16 = vector.extract_strided_slice %8 {offsets = [0, 128], sizes = [128, 64], strides = [1, 1]} : vector<128x192xf32> to vector<128x64xf32>
    %17 = arith.truncf %16 : vector<128x64xf32> to vector<128x64xbf16>
    %18 = tpu.transpose %15, [1, 0] : vector<128x64xbf16> -> vector<64x128xbf16>
    %cst_8 = arith.constant dense<0.000000e+00> : vector<128x128xf32>
    %19 = tpu.matmul %13, %18, %cst_8 {dimension_numbers = #tpu.dot_dimension_numbers<[1], [0], [0], [1], [0, 0, 1, 1], [], []>} : vector<128x64xbf16>, vector<64x128xbf16>, vector<128x128xf32> -> vector<128x128xf32>
    %20 = tpu.iota {dimensions = array<i32: 0>} : vector<128x128xi32>
    %21 = tpu.iota {dimensions = array<i32: 1>} : vector<128x128xi32>
    %22 = arith.cmpi sle, %21, %20 : vector<128x128xi32>
    %cst_9 = arith.constant 0xFF800000 : f32
    %23 = vector.broadcast %cst_9 : f32 to vector<128x128xf32>
    %24 = arith.select %22, %19, %23 : vector<128x128xi1>, vector<128x128xf32>
    %cst_10 = arith.constant dense<0xFF800000> : vector<128xf32>
    %25 = vector.multi_reduction <maximumf>, %24, %cst_10 [1] : vector<128x128xf32> to vector<128xf32>
    %26 = vector.shape_cast %25 : vector<128xf32> to vector<128x1xf32>
    %27 = vector.broadcast %26 : vector<128x1xf32> to vector<128x128xf32>
    %28 = arith.subf %24, %27 : vector<128x128xf32>
    %29 = math.exp %28 : vector<128x128xf32>
    %cst_11 = arith.constant dense<0.000000e+00> : vector<128xf32>
    %30 = vector.multi_reduction <add>, %29, %cst_11 [1] : vector<128x128xf32> to vector<128xf32>
    %31 = vector.shape_cast %30 : vector<128xf32> to vector<128x1xf32>
    %32 = tpu.reciprocal %31 {approx = true} : vector<128x1xf32> -> vector<128x1xf32>
    %33 = vector.broadcast %32 : vector<128x1xf32> to vector<128x128xf32>
    %34 = arith.mulf %29, %33 : vector<128x128xf32>
    %35 = arith.truncf %34 : vector<128x128xf32> to vector<128x128xbf16>
    %cst_12 = arith.constant dense<0.000000e+00> : vector<128x64xf32>
    %36 = tpu.matmul %35, %17, %cst_12 {dimension_numbers = #tpu.dot_dimension_numbers<[1], [0], [0], [1], [0, 0, 1, 1], [], []>} : vector<128x128xbf16>, vector<128x64xbf16>, vector<128x64xf32> -> vector<128x64xf32>
    %c0_13 = arith.constant 0 : index
    %c0_14 = arith.constant 0 : index
    %37 = vector.load %arg7[%c0_13, %c0_14] : memref<128x384xf32, #tpu.memory_space<vmem>>, vector<128x384xf32>
    %38 = arith.truncf %36 : vector<128x64xf32> to vector<128x64xbf16>
    %c0_15 = arith.constant 0 : index
    %c0_16 = arith.constant 0 : index
    %c0_17 = arith.constant 0 : index
    %39 = vector.load %arg4[%c0_15, %c0_16, %c0_17] : memref<1x64x384xbf16, #tpu.memory_space<vmem>>, vector<1x64x384xbf16>
    %40 = vector.shape_cast %39 : vector<1x64x384xbf16> to vector<64x384xbf16>
    %cst_18 = arith.constant dense<0.000000e+00> : vector<128x384xf32>
    %41 = tpu.matmul %38, %40, %cst_18 {dimension_numbers = #tpu.dot_dimension_numbers<[1], [0], [0], [1], [0, 0, 1, 1], [], []>} : vector<128x64xbf16>, vector<64x384xbf16>, vector<128x384xf32> -> vector<128x384xf32>
    %42 = arith.addf %37, %41 : vector<128x384xf32>
    %c0_19 = arith.constant 0 : index
    %c0_20 = arith.constant 0 : index
    %43 = vector.load %arg7[%c0_19, %c0_20] : memref<128x384xf32, #tpu.memory_space<vmem>>, vector<128x384xf32>
    tpu.vector_store %arg7[%c0_19, %c0_20], %42 {strides = array<i32>} : memref<128x384xf32, #tpu.memory_space<vmem>>, vector<128x384xf32>,
    %c5_i32 = arith.constant 5 : i32
    %44 = arith.cmpi eq, %arg1, %c5_i32 : i32
    %45 = arith.extui %44 : i1 to i32
    %c0_i32_21 = arith.constant 0 : i32
    %46 = arith.cmpi ne, %45, %c0_i32_21 : i32
    scf.if %46 {
      %c0_22 = arith.constant 0 : index
      %c0_23 = arith.constant 0 : index
      %47 = vector.load %arg7[%c0_22, %c0_23] : memref<128x384xf32, #tpu.memory_space<vmem>>, vector<128x384xf32>
      %c0_24 = arith.constant 0 : index
      %c0_25 = arith.constant 0 : index
      %48 = vector.load %arg5[%c0_24, %c0_25] : memref<1x384xf32, #tpu.memory_space<vmem>>, vector<1x384xf32>
      %49 = vector.broadcast %48 : vector<1x384xf32> to vector<128x384xf32>
      %50 = arith.addf %47, %49 : vector<128x384xf32>
      %c0_26 = arith.constant 0 : index
      %c0_27 = arith.constant 0 : index
      %c0_28 = arith.constant 0 : index
      %51 = vector.load %arg6[%c0_26, %c0_27, %c0_28] : memref<1x128x384xf32, #tpu.memory_space<vmem>>, vector<1x128x384xf32>
      %52 = vector.shape_cast %51 : vector<1x128x384xf32> to vector<128x384xf32>
      %53 = vector.shape_cast %50 : vector<128x384xf32> to vector<1x128x384xf32>
      tpu.vector_store %arg6[%c0_26, %c0_27, %c0_28], %53 {strides = array<i32>} : memref<1x128x384xf32, #tpu.memory_space<vmem>>, vector<1x128x384xf32>,
    } else {
    }
    return
  }
  func.func @transform_0(%arg0: i32, %arg1: i32) -> (i32, i32, i32) {
    %c0_i32 = arith.constant 0 : i32
    %c0_i32_0 = arith.constant 0 : i32
    %c0_i32_1 = arith.constant 0 : i32
    return %arg0, %c0_i32, %c0_i32_0 : i32, i32, i32
  }
  func.func @transform_1(%arg0: i32, %arg1: i32) -> (i32, i32, i32) {
    %c0_i32 = arith.constant 0 : i32
    %c0_i32_0 = arith.constant 0 : i32
    %c0_i32_1 = arith.constant 0 : i32
    return %arg1, %c0_i32, %c0_i32_0 : i32, i32, i32
  }
  func.func @transform_2(%arg0: i32, %arg1: i32) -> (i32, i32, i32) {
    %c0_i32 = arith.constant 0 : i32
    %c0_i32_0 = arith.constant 0 : i32
    %c0_i32_1 = arith.constant 0 : i32
    return %arg1, %c0_i32, %c0_i32_0 : i32, i32, i32
  }
  func.func @transform_3(%arg0: i32, %arg1: i32) -> (i32, i32) {
    %c0_i32 = arith.constant 0 : i32
    %c0_i32_0 = arith.constant 0 : i32
    %c0_i32_1 = arith.constant 0 : i32
    return %c0_i32, %c0_i32_0 : i32, i32
  }
  func.func @transform_4(%arg0: i32, %arg1: i32) -> (i32, i32, i32) {
    %c0_i32 = arith.constant 0 : i32
    %c0_i32_0 = arith.constant 0 : i32
    %c0_i32_1 = arith.constant 0 : i32
    return %arg0, %c0_i32, %c0_i32_0 : i32, i32, i32
  }
}

</mosaic_0001>

<bundles_post_ra>
// kernel: tpu_custom_call.1
= control target key start
LH: loop header
LB: loop body
LE: loop exit
PB: predicated region body
PF: predicated region fallthrough
CT: control target
= control target key end

     0   :  { %9 = vsyncpa [#allocation4], 0  ;;  %s3472_s0 = inlined_call_operand.vmem [shape: f32[2,128,384], index: 0, kind: input, shape index: {}]   ;;  %s3473_s1 = inlined_call_operand.vmem [shape: bf16[6,384,192], index: 1, kind: input, shape index: {}]   ;;  %s3474_s2 = inlined_call_operand.vmem [shape: bf16[6,64,384], index: 2, kind: input, shape index: {}]   ;;  %s3475_s3 = inlined_call_operand.vmem [shape: f32[1,384], index: 3, kind: input, shape index: {}]   ;;  %s3476_s4 = inlined_call_operand.hbm [shape: f32[2,128,384], index: 4, kind: output, shape index: {}]  }
   0x1   :  { %11 = vsyncpa [#allocation4 + $0x1], 0  ;;  %s2734_s15 = smov 0   ;;  %s2736_s16 = smov 0  }
   0x2   :  { %s2738_s17 = smov 0   ;;  %s2740_s18 = smov 0  }
   0x3   :  { %s2742_s19 = smov 0   ;;  %s2744_s20 = smov 0  }
   0x4   :  { %s2746_s21 = smov 0   ;;  %s2748_s22 = smov 0  }
   0x5 LB: > { %3482 = sst [smem:[#allocation6_spill]] %s2697_s21  ;;  %s2139_s23 = sadd.s32 4294967295, %s2701_s22   ;;  %s2701_s22 = sphi %s2748_s22, %s17_s22   ;;  %s2697_s21 = sphi %s2746_s21, %s3493_s21   ;;  %s2693_s20 = sphi %s2744_s20, %s3498_s20   ;;  %s2689_s19 = sphi %s2742_s19, %s3491_s19   ;;  %s2685_s18 = sphi %s2740_s18, %s3497_s18   ;;  %s2681_s17 = sphi %s2738_s17, %s3496_s17   ;;  %s2677_s16 = sphi %s2736_s16, %s3495_s16   ;;  %s2673_s15 = sphi %s2734_s15, %s3494_s15  }
   0x6   : > { %s2140_s24 = sadd.s32 4294967294, %s2701_s22   ;;  %s26_s25 = sadd.s32 1, %s2693_s20 }
   0x7   : > { %p27_p0 = scmp.ge.s32.totalorder %s26_s25, 6  ;;  %s29_s26 = sadd.s32 1, %s2697_s21 }
   0x8   : > { %p145_p1 = scmp.ne.s32.totalorder %s2681_s17, %s2677_s16  ;;  %p146_p2 = scmp.eq.s32.totalorder %s2139_s23, 11 }
   0x9   : > { %s3500_s25 = smov (%p27_p0, %s26_s25), 0  ;;  %s3502_s26 = smov (!%p27_p0, %s29_s26), %s2697_s21 }
   0xa   : > { %3483 = sst [smem:[#allocation7_spill]] %s3500_s25  ;;  %p2783_p3 = por %p146_p2, %p145_p1 }
   0xb   : > { %p151_p4 = scmp.ne.s32.totalorder %s2677_s16, %s2673_s15  ;;  %p31_p5 = scmp.ge.s32.totalorder %s3502_s26, 2 }
   0xc   : > { %p152_p6 = scmp.eq.s32.totalorder %s2140_s24, 11  ;;  %p2143_p7 = scmp.ge.s32.totalorder %s2701_s22, 1 }
   0xd   : > { %p197_p8 = scmp.lt.s32.totalorder %s2701_s22, 13  ;;  %s3504_s26 = smov (%p31_p5, %s3502_s26), 0 }
   0xe   : > { %3485 = sst [smem:[#allocation8_spill]] %s3504_s26  ;;  %p2793_p9 = por %p152_p6, %p151_p4 }
   0xf   : > { %p198_p10 = pnand %p2143_p7, %p197_p8  ;;  %s132_s29 = ssub.s32 %s2697_s21, %s3504_s26 }
  0x10   : > { %s135_s30 = sadd.s32 1, %s2681_s17  ;;  %p133_p11 = scmp.eq.s32.totalorder %s132_s29, 0 }
  0x11   : > { %201 = sbr.rel (%p198_p10) target bundleno = 1589 (0x635), region = 36  ;;  %s3478_s6 = sand.u32 (!%p198_p10), 1, %s2677_s16  }
  0x12   : > { %s2801_s5 = scalar_select %p133_p11, %s2681_s17, %s135_s30  }
  0x13   : > { %p233_p12 = scmp.lt.s32.totalorder (!%p198_p10), %s2689_s19, 1  ;;  %s2376_s7 = smul.u32 (!%p198_p10), 384, %s3478_s6 }
  0x14   : > { %p238_p13 = scmp.lt.s32.totalorder (!%p198_p10), %s2685_s18, 5  ;;  %p2147_p0 = scmp.ne.s32.totalorder (!%p198_p10), %s2685_s18, 0 }
  0x15   : > { %s2825_s21 = scalar_lea.vmem (!%p198_p10), [#allocation3], %s2376_s7 }
  0x16   : > { %s234_s8 = scalar_select %p233_p12, %s2689_s19, 1 }
  0x17   : > { %s239_s10 = scalar_select %p238_p13, %s2685_s18, 5 }
  0x18   : > { %s2377_s9 = smul.u32 384, %s234_s8 }
  0x19   : > { %s2378_s14 = smul.u32 384, %s239_s10 }
  0x1a   : > { %s2813_s13 = scalar_lea.vmem %s3472_s0, %s2377_s9  ;;  %s2379_s23 = smul.u32 96, %s239_s10 }
  0x1b   : > { %s2818_s30 = scalar_lea.vmem %s3473_s1, %s2378_s14  ;;  %252 = sbr.rel (%p2147_p0) target bundleno = 57 (0x39), region = 40 }
  0x1c   : > { %s2823_s6 = scalar_lea.vmem %s3474_s2, %s2379_s23 }
  0x20   : > { %v2703_v0 = vmov 0.0  }
  0x21   : > { %253 = vst [vmem:[#allocation2 + $0xb0] sm:$0xff] %v2703_v0  ;;  %254 = vst [vmem:[#allocation2 + $0xd0] sm:$0xff] %v2703_v0 }
  0x22   : > { %255 = vst [vmem:[#allocation2 + $0x10] sm:$0xff] %v2703_v0  ;;  %256 = vst [vmem:[#allocation2 + $0x48] sm:$0xff] %v2703_v0 }
  0x23   : > { %257 = vst [vmem:[#allocation2 + $0x160] sm:$0xff] %v2703_v0  ;;  %258 = vst [vmem:[#allocation2 + $0x128] sm:$0xff] %v2703_v0 }
  0x24   : > { %259 = vst [vmem:[#allocation2 + $0x40] sm:$0xff] %v2703_v0  ;;  %260 = vst [vmem:[#allocation2 + $0x178] sm:$0xff] %v2703_v0 }
  0x25   : > { %261 = vst [vmem:[#allocation2 + $0x108] sm:$0xff] %v2703_v0  ;;  %262 = vst [vmem:[#allocation2 + $0x110] sm:$0xff] %v2703_v0 }
  0x26   : > { %263 = vst [vmem:[#allocation2 + $0x90] sm:$0xff] %v2703_v0  ;;  %264 = vst [vmem:[#allocation2 + $0x118] sm:$0xff] %v2703_v0 }
  0x27   : > { %265 = vst [vmem:[#allocation2 + $0x148] sm:$0xff] %v2703_v0  ;;  %266 = vst [vmem:[#allocation2 + $0x100] sm:$0xff] %v2703_v0 }
  0x28   : > { %267 = vst [vmem:[#allocation2 + $0x58] sm:$0xff] %v2703_v0  ;;  %268 = vst [vmem:[#allocation2 + $0xd8] sm:$0xff] %v2703_v0 }
  0x29   : > { %269 = vst [vmem:[#allocation2 + $0x80] sm:$0xff] %v2703_v0  ;;  %270 = vst [vmem:[#allocation2 + $0x130] sm:$0xff] %v2703_v0 }
  0x2a   : > { %271 = vst [vmem:[#allocation2 + $0x138] sm:$0xff] %v2703_v0  ;;  %272 = vst [vmem:[#allocation2 + $0x120] sm:$0xff] %v2703_v0 }
  0x2b   : > { %273 = vst [vmem:[#allocation2 + $0xe0] sm:$0xff] %v2703_v0  ;;  %274 = vst [vmem:[#allocation2 + $0xa8] sm:$0xff] %v2703_v0 }
  0x2c   : > { %275 = vst [vmem:[#allocation2 + $0xb8] sm:$0xff] %v2703_v0  ;;  %276 = vst [vmem:[#allocation2 + $0x168] sm:$0xff] %v2703_v0 }
  0x2d   : > { %277 = vst [vmem:[#allocation2 + $0xe8] sm:$0xff] %v2703_v0  ;;  %278 = vst [vmem:[#allocation2 + $0xf8] sm:$0xff] %v2703_v0 }
  0x2e   : > { %279 = vst [vmem:[#allocation2 + $0x20] sm:$0xff] %v2703_v0  ;;  %280 = vst [vmem:[#allocation2 + $0x88] sm:$0xff] %v2703_v0 }
  0x2f   : > { %281 = vst [vmem:[#allocation2 + $0xa0] sm:$0xff] %v2703_v0  ;;  %282 = vst [vmem:[#allocation2 + $0x170] sm:$0xff] %v2703_v0 }
  0x30   : > { %283 = vst [vmem:[#allocation2 + $0xf0] sm:$0xff] %v2703_v0  ;;  %284 = vst [vmem:[#allocation2 + $0x140] sm:$0xff] %v2703_v0 }
  0x31   : > { %285 = vst [vmem:[#allocation2 + $0x60] sm:$0xff] %v2703_v0  ;;  %286 = vst [vmem:[#allocation2 + $0xc8] sm:$0xff] %v2703_v0 }
  0x32   : > { %287 = vst [vmem:[#allocation2 + $0x28] sm:$0xff] %v2703_v0  ;;  %288 = vst [vmem:[#allocation2 + $0x38] sm:$0xff] %v2703_v0 }
  0x33   : > { %289 = vst [vmem:[#allocation2 + $0xc0] sm:$0xff] %v2703_v0  ;;  %290 = vst [vmem:[#allocation2 + $0x18] sm:$0xff] %v2703_v0 }
  0x34   : > { %291 = vst [vmem:[#allocation2 + $0x98] sm:$0xff] %v2703_v0  ;;  %292 = vst [vmem:[#allocation2 + $0x8] sm:$0xff] %v2703_v0 }
  0x35   : > { %293 = vst [vmem:[#allocation2] sm:$0xff] %v2703_v0  ;;  %294 = vst [vmem:[#allocation2 + $0x78] sm:$0xff] %v2703_v0 }
  0x36   : > { %295 = vst [vmem:[#allocation2 + $0x50] sm:$0xff] %v2703_v0  ;;  %296 = vst [vmem:[#allocation2 + $0x68] sm:$0xff] %v2703_v0 }
  0x37   : > { %297 = vst [vmem:[#allocation2 + $0x70] sm:$0xff] %v2703_v0  ;;  %298 = vst [vmem:[#allocation2 + $0x30] sm:$0xff] %v2703_v0 }
  0x38   : > { %299 = vst [vmem:[#allocation2 + $0x158] sm:$0xff] %v2703_v0  ;;  %300 = vst [vmem:[#allocation2 + $0x150] sm:$0xff] %v2703_v0 }
  0x39 PF: > { %v2457_v1 = vld [vmem:[%s2818_s30 + $0x74] ss:$8 sps:$4 sm:$0xff]   ;;  %v2459_v2 = vld [vmem:[%s2818_s30 + $0x70] ss:$8 sps:$4 sm:$0xff]   ;;  %v3480_v3 = vmov 0   ;;  %v302_v34 = vld [vmem:[%s2813_s13 + $0x8] sm:$0xff] }
  0x3a   : > { %806 = vmatprep.mubr.bf16.mxu1 %v3480_v3  ;;  %661 = vmatprep.subr.bf16.mxu0 %v2457_v1  ;;  %v2460_v4 = vld [vmem:[%s2818_s30 + $0x64] ss:$8 sps:$4 sm:$0xff]   ;;  %v2462_v5 = vld [vmem:[%s2818_s30 + $0x60] ss:$8 sps:$4 sm:$0xff]   ;;  %v2463_v6 = vld [vmem:[%s2818_s30 + $0x54] ss:$8 sps:$4 sm:$0xff]  }
  0x3b   : > { %662 = vmatpush1.bf16.msra.mxu0 %v2459_v2  ;;  %v2465_v7 = vld [vmem:[%s2818_s30 + $0x50] ss:$8 sps:$4 sm:$0xff]   ;;  %v2466_v8 = vld [vmem:[%s2818_s30 + $0x44] ss:$8 sps:$4 sm:$0xff]   ;;  %v2478_v9 = vld [vmem:[%s2818_s30 + $0x174] ss:$8 sps:$4 sm:$0xff]  }
  0x3c   : > { %663 = vmatprep.subr.bf16.mxu0 %v2460_v4  ;;  %v2480_v10 = vld [vmem:[%s2818_s30 + $0x170] ss:$8 sps:$4 sm:$0xff]   ;;  %v2468_v11 = vld [vmem:[%s2818_s30 + $0x40] ss:$8 sps:$4 sm:$0xff]   ;;  %v2469_v12 = vld [vmem:[%s2818_s30 + $0x34] ss:$8 sps:$4 sm:$0xff]   ;;  %774 = vmatprep.subr.bf16.mxu1 %v2478_v9 }
  0x3d   : > { %v2484_v13 = vld [vmem:[%s2818_s30 + $0x164] ss:$8 sps:$4 sm:$0xff]   ;;  %775 = vmatpush1.bf16.msra.mxu1 %v2480_v10  ;;  %v2486_v14 = vld [vmem:[%s2818_s30 + $0x160] ss:$8 sps:$4 sm:$0xff]   ;;  %v2471_v15 = vld [vmem:[%s2818_s30 + $0x30] ss:$8 sps:$4 sm:$0xff]  }
  0x3e   : > { %776 = vmatprep.subr.bf16.mxu1 %v2484_v13  ;;  %v2490_v16 = vld [vmem:[%s2818_s30 + $0x154] ss:$8 sps:$4 sm:$0xff]   ;;  %v2472_v17 = vld [vmem:[%s2818_s30 + $0x24] ss:$8 sps:$4 sm:$0xff]   ;;  %v2492_v18 = vld [vmem:[%s2818_s30 + $0x150] ss:$8 sps:$4 sm:$0xff]  }
  0x3f   : > { %664 = vmatpush1.bf16.msra.mxu0 %v2462_v5  ;;  %v2496_v19 = vld [vmem:[%s2818_s30 + $0x144] ss:$8 sps:$4 sm:$0xff]   ;;  %v2474_v20 = vld [vmem:[%s2818_s30 + $0x20] ss:$8 sps:$4 sm:$0xff]   ;;  %v2475_v21 = vld [vmem:[%s2818_s30 + $0x14] ss:$8 sps:$4 sm:$0xff]  }
  0x40   : > { %665 = vmatprep.subr.bf16.mxu0 %v2463_v6  ;;  %v2498_v22 = vld [vmem:[%s2818_s30 + $0x140] ss:$8 sps:$4 sm:$0xff]   ;;  %v2502_v23 = vld [vmem:[%s2818_s30 + $0x134] ss:$8 sps:$4 sm:$0xff]   ;;  %v2477_v24 = vld [vmem:[%s2818_s30 + $0x10] ss:$8 sps:$4 sm:$0xff]  }
  0x41   : > { %777 = vmatpush1.bf16.msra.mxu1 %v2486_v14  ;;  %v2481_v25 = vld [vmem:[%s2818_s30 + $0x4] ss:$8 sps:$4 sm:$0xff]   ;;  %v2504_v26 = vld [vmem:[%s2818_s30 + $0x130] ss:$8 sps:$4 sm:$0xff]   ;;  %v2483_v28 = vld [vmem:[%s2818_s30] ss:$8 sps:$4 sm:$0xff]  }
  0x42   : > { %778 = vmatprep.subr.bf16.mxu1 %v2490_v16  ;;  %v2508_v27 = vld [vmem:[%s2818_s30 + $0x124] ss:$8 sps:$4 sm:$0xff]   ;;  %v2487_v29 = vld [vmem:[%s2818_s30 + $0xf4] ss:$8 sps:$4 sm:$0xff]   ;;  %v2510_v30 = vld [vmem:[%s2818_s30 + $0x120] ss:$8 sps:$4 sm:$0xff]  }
  0x43   : > { %666 = vmatpush1.bf16.msra.mxu0 %v2465_v7  ;;  %v2514_v31 = vld [vmem:[%s2818_s30 + $0x114] ss:$8 sps:$4 sm:$0xff]   ;;  %v2489_v32 = vld [vmem:[%s2818_s30 + $0xf0] ss:$8 sps:$4 sm:$0xff]   ;;  %v2493_v33 = vld [vmem:[%s2818_s30 + $0xe4] ss:$8 sps:$4 sm:$0xff]  }
  0x44   : > { %667 = vmatprep.subr.bf16.mxu0 %v2466_v8  ;;  %v2516_v35 = vld [vmem:[%s2818_s30 + $0x110] ss:$8 sps:$4 sm:$0xff]   ;;  %v305_v36 = vld [vmem:[%s2813_s13 + $0x20] sm:$0xff]  ;;  %v2499_v40 = vld [vmem:[%s2818_s30 + $0xd4] ss:$8 sps:$4 sm:$0xff]   ;;  %vm951_vm0 = vcmask 523264  }
  0x45   : > { %779 = vmatpush1.bf16.msra.mxu1 %v2492_v18  ;;  %v2520_v37 = vld [vmem:[%s2818_s30 + $0x104] ss:$8 sps:$4 sm:$0xff]   ;;  %v350_v38 = vpack.c.bf16 %v305_v36, %v302_v34  ;;  %v2495_v39 = vld [vmem:[%s2818_s30 + $0xe0] ss:$8 sps:$4 sm:$0xff]   ;;  %v303_v42 = vld [vmem:[%s2813_s13 + $0x10] sm:$0xff]  ;;  %s2705_s25 = smov 64  }
  0x46   : > { %780 = vmatprep.subr.bf16.mxu1 %v2496_v19  ;;  %v2522_v41 = vld [vmem:[%s2818_s30 + $0x100] ss:$8 sps:$4 sm:$0xff]   ;;  %v2501_v44 = vld [vmem:[%s2818_s30 + $0xd0] ss:$8 sps:$4 sm:$0xff]   ;;  %v2505_v45 = vld [vmem:[%s2818_s30 + $0xc4] ss:$8 sps:$4 sm:$0xff]  }
  0x47   : > { %668 = vmatpush1.bf16.msra.mxu0 %v2468_v11  ;;  %693 = vmatprep.mubr.bf16.mxu0 %v350_v38  ;;  %v306_v43 = vld [vmem:[%s2813_s13 + $0x28] sm:$0xff]  ;;  %v2511_v48 = vld [vmem:[%s2818_s30 + $0xb4] ss:$8 sps:$4 sm:$0xff]   ;;  %v309_v49 = vld [vmem:[%s2813_s13 + $0x40] sm:$0xff]  ;;  %p2232_p1 = scmp.ne.s32.totalorder %s2685_s18, 5 }
  0x48   : > { %669 = vmatprep.subr.bf16.mxu0 %v2469_v12  ;;  %v351_v46 = vpack.c.bf16 %v306_v43, %v303_v42  ;;  %v2507_v47 = vld [vmem:[%s2818_s30 + $0xc0] ss:$8 sps:$4 sm:$0xff]   ;;  %v312_v50 = vld [vmem:[%s2813_s13 + $0x58] sm:$0xff]  ;;  %v2517_v52 = vld [vmem:[%s2818_s30 + $0xa4] ss:$8 sps:$4 sm:$0xff]  }
  0x49   : > { %781 = vmatpush1.bf16.msra.mxu1 %v2498_v22  ;;  %v2513_v51 = vld [vmem:[%s2818_s30 + $0xb0] ss:$8 sps:$4 sm:$0xff]   ;;  %v354_v53 = vpack.c.bf16 %v312_v50, %v309_v49  ;;  %v2519_v54 = vld [vmem:[%s2818_s30 + $0xa0] ss:$8 sps:$4 sm:$0xff]   ;;  %v2523_v55 = vld [vmem:[%s2818_s30 + $0x94] ss:$8 sps:$4 sm:$0xff]  }
  0x4a   : > { %782 = vmatprep.subr.bf16.mxu1 %v2502_v23  ;;  %v315_v56 = vld [vmem:[%s2813_s13 + $0x70] sm:$0xff]  ;;  %v318_v57 = vld [vmem:[%s2813_s13 + $0x88] sm:$0xff]  ;;  %v301_v62 = vld [vmem:[%s2813_s13] sm:$0xff] }
  0x4b   : > { %670 = vmatpush1.bf16.msra.mxu0 %v2471_v15  ;;  %v2525_v58 = vld [vmem:[%s2818_s30 + $0x90] ss:$8 sps:$4 sm:$0xff]   ;;  %v2526_v59 = vld [vmem:[%s2818_s30 + $0x84] ss:$8 sps:$4 sm:$0xff]   ;;  %v357_v60 = vpack.c.bf16 %v318_v57, %v315_v56  ;;  %v2528_v61 = vld [vmem:[%s2818_s30 + $0x80] ss:$8 sps:$4 sm:$0xff]  }
  0x4c   : > { %671 = vmatprep.subr.bf16.mxu0 %v2472_v17  ;;  %v304_v63 = vld [vmem:[%s2813_s13 + $0x18] sm:$0xff]  ;;  %v311_v1 = vld [vmem:[%s2813_s13 + $0x50] sm:$0xff]  ;;  %v321_v2 = vld [vmem:[%s2813_s13 + $0xa0] sm:$0xff] }
  0x4d   : > { %783 = vmatpush1.bf16.msra.mxu1 %v2504_v26  ;;  %v308_v0 = vld [vmem:[%s2813_s13 + $0x38] sm:$0xff]  ;;  %v349_v5 = vpack.c.bf16 %v304_v63, %v301_v62  ;;  %v307_v8 = vld [vmem:[%s2813_s13 + $0x30] sm:$0xff]  ;;  %v310_v9 = vld [vmem:[%s2813_s13 + $0x48] sm:$0xff] }
  0x4e   : > { %784 = vmatprep.subr.bf16.mxu1 %v2508_v27  ;;  %v324_v4 = vld [vmem:[%s2813_s13 + $0xb8] sm:$0xff]  ;;  %v353_v6 = vpack.c.bf16 %v311_v1, %v308_v0  ;;  %v314_v10 = vld [vmem:[%s2813_s13 + $0x68] sm:$0xff]  ;;  %v317_v11 = vld [vmem:[%s2813_s13 + $0x80] sm:$0xff]  ;;  %v352_v14 = vpack.c.bf16 %v310_v9, %v307_v8 }
  0x4f   : > { %672 = vmatpush1.bf16.msra.mxu0 %v2474_v20  ;;  %v360_v7 = vpack.c.bf16 %v324_v4, %v321_v2  ;;  %v327_v12 = vld [vmem:[%s2813_s13 + $0xd0] sm:$0xff]  ;;  %v330_v13 = vld [vmem:[%s2813_s13 + $0xe8] sm:$0xff]  ;;  %v356_v15 = vpack.c.bf16 %v317_v11, %v314_v10  ;;  %v313_v17 = vld [vmem:[%s2813_s13 + $0x60] sm:$0xff] }
  0x50   : > { %673 = vmatprep.subr.bf16.mxu0 %v2475_v21  ;;  %v363_v16 = vpack.c.bf16 %v330_v13, %v327_v12  ;;  %v316_v18 = vld [vmem:[%s2813_s13 + $0x78] sm:$0xff]  ;;  %v323_v20 = vld [vmem:[%s2813_s13 + $0xb0] sm:$0xff]  ;;  %v333_v21 = vld [vmem:[%s2813_s13 + $0x100] sm:$0xff] }
  0x51   : > { %785 = vmatpush1.bf16.msra.mxu1 %v2510_v30  ;;  %v320_v19 = vld [vmem:[%s2813_s13 + $0x98] sm:$0xff]  ;;  %v355_v23 = vpack.c.bf16 %v316_v18, %v313_v17  ;;  %v319_v26 = vld [vmem:[%s2813_s13 + $0x90] sm:$0xff]  ;;  %v322_v27 = vld [vmem:[%s2813_s13 + $0xa8] sm:$0xff] }
  0x52   : > { %786 = vmatprep.subr.bf16.mxu1 %v2514_v31  ;;  %v336_v22 = vld [vmem:[%s2813_s13 + $0x118] sm:$0xff]  ;;  %v339_v30 = vld [vmem:[%s2813_s13 + $0x130] sm:$0xff]  ;;  %v342_v31 = vld [vmem:[%s2813_s13 + $0x148] sm:$0xff] }
  0x53   : > { %674 = vmatpush1.bf16.msra.mxu0 %v2477_v24  ;;  %v359_v24 = vpack.c.bf16 %v323_v20, %v320_v19  ;;  %v369_v34 = vpack.c.bf16 %v342_v31, %v339_v30  ;;  %v328_v36 = vld [vmem:[%s2813_s13 + $0xd8] sm:$0xff]  ;;  %v335_v38 = vld [vmem:[%s2813_s13 + $0x110] sm:$0xff]  ;;  %v337_v50 = vld [vmem:[%s2813_s13 + $0x120] sm:$0xff] }
  0x54   : > { %675 = vmatprep.subr.bf16.mxu0 %v2481_v25  ;;  %v366_v25 = vpack.c.bf16 %v336_v22, %v333_v21  ;;  %v343_v56 = vld [vmem:[%s2813_s13 + $0x150] sm:$0xff]  ;;  %v346_v57 = vld [vmem:[%s2813_s13 + $0x168] sm:$0xff] }
  0x55   : > { %787 = vmatpush1.bf16.msra.mxu1 %v2516_v35  ;;  %v325_v35 = vld [vmem:[%s2813_s13 + $0xc0] sm:$0xff] }
  0x56   : > { %788 = vmatprep.subr.bf16.mxu1 %v2520_v37  ;;  %v332_v37 = vld [vmem:[%s2813_s13 + $0xf8] sm:$0xff] }
  0x57   : > { %676 = vmatpush1.bf16.msra.mxu0 %v2483_v28  ;;  %v326_v28 = vld [vmem:[%s2813_s13 + $0xc8] sm:$0xff]  ;;  %v365_v42 = vpack.c.bf16 %v335_v38, %v332_v37 }
  0x58   : > { %677 = vmatprep.subr.bf16.mxu0 %v2487_v29  ;;  %v329_v29 = vld [vmem:[%s2813_s13 + $0xe0] sm:$0xff] }
  0x59   : > { %789 = vmatpush1.bf16.msra.mxu1 %v2522_v41  ;;  %v361_v41 = vpack.c.bf16 %v328_v36, %v325_v35 }
  0x5b   : > { %678 = vmatpush2.bf16.msra.mxu0 %v2489_v32  ;;  %v358_v32 = vpack.c.bf16 %v322_v27, %v319_v26 }
  0x5c   : > { %679 = vmatprep.subr.bf16.mxu0 %v2493_v33  ;;  %807 = vmatmul.mubr.bf16.vlgmr.msra.gmra.mxu1 %v351_v46  ;;  %v362_v33 = vpack.c.bf16 %v329_v29, %v326_v28  ;;  %v338_v46 = vld [vmem:[%s2813_s13 + $0x128] sm:$0xff] }
  0x5d   : > { %816 = vmatprep.mubr.bf16.mxu1 %v3480_v3 }
  0x5f   : > { %680 = vmatpush2.bf16.msra.mxu0 %v2495_v39  ;;  %v345_v39 = vld [vmem:[%s2813_s13 + $0x160] sm:$0xff] }
  0x60   : > { %681 = vmatprep.subr.bf16.mxu0 %v2499_v40  ;;  %v348_v40 = vld [vmem:[%s2813_s13 + $0x178] sm:$0xff] }
  0x61   : > { %v372_v43 = vpack.c.bf16 %v348_v40, %v345_v39 }
  0x63   : > { %682 = vmatpush2.bf16.msra.mxu0 %v2501_v44  ;;  %v331_v44 = vld [vmem:[%s2813_s13 + $0xf0] sm:$0xff] }
  0x64   : > { %683 = vmatprep.subr.bf16.mxu0 %v2505_v45  ;;  %817 = vmatmul.mubr.bf16.gmra.mxu1 %v354_v53  ;;  %v334_v45 = vld [vmem:[%s2813_s13 + $0x108] sm:$0xff]  ;;  %v347_v53 = vld [vmem:[%s2813_s13 + $0x170] sm:$0xff] }
  0x65   : > { %826 = vmatprep.mubr.bf16.mxu1 %v3480_v3 }
  0x67   : > { %684 = vmatpush2.bf16.msra.mxu0 %v2507_v47  ;;  %v341_v47 = vld [vmem:[%s2813_s13 + $0x140] sm:$0xff] }
  0x68   : > { %685 = vmatprep.subr.bf16.mxu0 %v2511_v48  ;;  %v364_v48 = vpack.c.bf16 %v334_v45, %v331_v44  ;;  %v368_v49 = vpack.c.bf16 %v341_v47, %v338_v46 }
  0x6b   : > { %686 = vmatpush2.bf16.msra.mxu0 %v2513_v51  ;;  %v340_v51 = vld [vmem:[%s2813_s13 + $0x138] sm:$0xff] }
  0x6c   : > { %687 = vmatprep.subr.bf16.mxu0 %v2517_v52  ;;  %827 = vmatmul.mubr.bf16.gmra.mxu1 %v357_v60  ;;  %v344_v52 = vld [vmem:[%s2813_s13 + $0x158] sm:$0xff] }
  0x6d   : > { %836 = vmatprep.mubr.bf16.mxu1 %v3480_v3 }
  0x6f   : > { %688 = vmatpush2.bf16.msra.mxu0 %v2519_v54  ;;  %v367_v54 = vpack.c.bf16 %v340_v51, %v337_v50 }
  0x70   : > { %689 = vmatprep.subr.bf16.mxu0 %v2523_v55  ;;  %v371_v55 = vpack.c.bf16 %v347_v53, %v344_v52 }
  0x73   : > { %690 = vmatpush2.bf16.msra.mxu0 %v2525_v58  ;;  %v370_v58 = vpack.c.bf16 %v346_v57, %v343_v56 }
  0x74   : > { %691 = vmatprep.subr.bf16.mxu0 %v2526_v59  ;;  %837 = vmatmul.mubr.bf16.gmra.mxu1 %v360_v7 }
  0x75   : > { %846 = vmatprep.mubr.bf16.mxu1 %v3480_v3 }
  0x77   : > { %692 = vmatpush2.bf16.msra.mxu0 %v2528_v61 }
  0x7a   : > { %694 = vmatmul.mubr.bf16.vlgmr.msra.gmra.mxu0 %v349_v5 }
  0x7b   : > { %703 = vmatprep.mubr.bf16.mxu0 %v353_v6 }
  0x7c   : > { %847 = vmatmul.mubr.bf16.gmra.mxu1 %v363_v16 }
  0x7d   : > { %856 = vmatprep.mubr.bf16.mxu1 %v3480_v3 }
  0x82   : > { %704 = vmatmul.mubr.bf16.gmra.mxu0 %v352_v14 }
  0x83   : > { %713 = vmatprep.mubr.bf16.mxu0 %v356_v15 }
  0x84   : > { %857 = vmatmul.mubr.bf16.gmra.mxu1 %v366_v25 }
  0x85   : > { %866 = vmatprep.mubr.bf16.mxu1 %v3480_v3 }
  0x8a   : > { %714 = vmatmul.mubr.bf16.gmra.mxu0 %v355_v23 }
  0x8b   : > { %723 = vmatprep.mubr.bf16.mxu0 %v359_v24 }
  0x8c   : > { %867 = vmatmul.mubr.bf16.gmra.mxu1 %v369_v34 }
  0x8d   : > { %876 = vmatprep.mubr.bf16.mxu1 %v3480_v3 }
  0x92   : > { %724 = vmatmul.mubr.bf16.gmra.mxu0 %v358_v32 }
  0x93   : > { %733 = vmatprep.mubr.bf16.mxu0 %v362_v33 }
  0x94   : > { %877 = vmatmul.mubr.bf16.gmra.mxu1 %v372_v43 }
  0x9a   : > { %734 = vmatmul.mubr.bf16.gmra.mxu0 %v361_v41 }
  0x9b   : > { %743 = vmatprep.mubr.bf16.mxu0 %v365_v42 }
  0xa2   : > { %744 = vmatmul.mubr.bf16.gmra.mxu0 %v364_v48 }
  0xa3   : > { %753 = vmatprep.mubr.bf16.mxu0 %v368_v49 }
  0xaa   : > { %754 = vmatmul.mubr.bf16.gmra.mxu0 %v367_v54 }
  0xab   : > { %763 = vmatprep.mubr.bf16.mxu0 %v371_v55 }
  0xb2   : > { %764 = vmatmul.mubr.bf16.gmra.mxu0 %v370_v58 }
 0x11c   : > { %v808_v59 = vpop.f32.mrf.mxu1 }
 0x11e   : > { %v810_v60 = vpop.f32.mrf.mxu1 }
 0x120   : > { %v812_v61 = vpop.f32.mrf.mxu1 }
 0x122   : > { %v814_v62 = vpop.f32.mrf.mxu1 }
 0x124   : > { %v818_v63 = vpop.f32.mrf.mxu1 }
 0x126   : > { %v820_v0 = vpop.f32.mrf.mxu1 }
 0x128   : > { %v822_v1 = vpop.f32.mrf.mxu1 }
 0x12a   : > { %v824_v2 = vpop.f32.mrf.mxu1 }
 0x12c   : > { %v828_v4 = vpop.f32.mrf.mxu1 }
 0x12e   : > { %v2932_v5 = vpop.f32.mrf.mxu1 }
 0x130   : > { %v832_v6 = vpop.f32.mrf.mxu1 }
 0x132   : > { %v2934_v8 = vpop.f32.mrf.mxu1 }
 0x134   : > { %v838_v10 = vpop.f32.mrf.mxu1 }
 0x136   : > { %v2938_v14 = vpop.f32.mrf.mxu1 }
 0x138   : > { %v842_v17 = vpop.f32.mrf.mxu1 }
 0x13a   : > { %v695_v7 = vpop.f32.mrf.mxu0  ;;  %v2944_v22 = vpop.f32.mrf.mxu1 }
 0x13b   : > { %v2936_v11 = vadd.f32 %v808_v59, %v695_v7 }
 0x13c   : > { %v697_v9 = vpop.f32.mrf.mxu0  ;;  %v848_v27 = vpop.f32.mrf.mxu1 }
 0x13d   : > { %v811_v12 = vadd.f32 %v810_v60, %v697_v9  ;;  %v887_v18 = vmul.f32 0.05103104, %v2936_v11 }
 0x13e   : > { %v699_v13 = vpop.f32.mrf.mxu0  ;;  %v2951_v30 = vpop.f32.mrf.mxu1 }
 0x13f   : > { %v2940_v15 = vadd.f32 %v812_v61, %v699_v13 }
 0x140   : > { %v701_v16 = vpop.f32.mrf.mxu0  ;;  %v852_v33 = vpop.f32.mrf.mxu1 }
 0x141   : > { %v888_v19 = vmul.f32 0.05103104, %v2940_v15  ;;  %v815_v20 = vadd.f32 %v814_v62, %v701_v16 }
 0x142   : > { %v705_v21 = vpop.f32.mrf.mxu0  ;;  %v2961_v38 = vpop.f32.mrf.mxu1 }
 0x143   : > { %v903_v23 = vpack.c.bf16 %v888_v19, %v887_v18  ;;  %v2946_v24 = vpack.c.bf16 %v815_v20, %v811_v12  ;;  %v2948_v25 = vadd.f32 %v818_v63, %v705_v21 }
 0x144   : > { %v707_v26 = vpop.f32.mrf.mxu0  ;;  %v858_v42 = vpop.f32.mrf.mxu1 }
 0x145   : > { %v821_v28 = vadd.f32 %v820_v0, %v707_v26  ;;  %2296 = vmatprep.mubr.msk.bf16.mxu1 %vm951_vm0, %v903_v23  ;;  %v2956_v34 = vmul.f32 0.05103104, %v2948_v25 }
 0x146   : > { %v709_v29 = vpop.f32.mrf.mxu0  ;;  %v2971_v47 = vpop.f32.mrf.mxu1 }
 0x147   : > { %v2953_v31 = vadd.f32 %v822_v1, %v709_v29 }
 0x148   : > { %v711_v32 = vpop.f32.mrf.mxu0  ;;  %v862_v53 = vpop.f32.mrf.mxu1 }
 0x149   : > { %v2959_v35 = vmul.f32 0.05103104, %v2953_v31  ;;  %v825_v36 = vadd.f32 %v824_v2, %v711_v32 }
 0x14a   : > { %v715_v37 = vpop.f32.mrf.mxu0  ;;  %v2987_v58 = vpop.f32.mrf.mxu1 }
 0x14b   : > { %v904_v39 = vpack.c.bf16 %v2959_v35, %v2956_v34  ;;  %v2965_v40 = vpack.c.bf16 %v825_v36, %v821_v28  ;;  %v829_v43 = vadd.f32 %v828_v4, %v715_v37 }
 0x14c   : > { %v2967_v41 = vpop.f32.mrf.mxu0  ;;  %v868_v0 = vpop.f32.mrf.mxu1 }
 0x14d   : > { %v2973_v48 = vmul.f32 0.05103104, %v829_v43 }
 0x14e   : > { %v719_v44 = vpop.f32.mrf.mxu0  ;;  %v870_v7 = vpop.f32.mrf.mxu1 }
 0x14f   : > { %v833_v45 = vadd.f32 %v832_v6, %v719_v44 }
 0x150   : > { %v2969_v46 = vpop.f32.mrf.mxu0 }
 0x151   : > { %v2975_v49 = vmul.f32 0.05103104, %v833_v45 }
 0x152   : > { %v725_v50 = vpop.f32.mrf.mxu0 }
 0x153   : > { %v905_v51 = vpack.c.bf16 %v2975_v49, %v2973_v48  ;;  %v2981_v54 = vadd.f32 %v838_v10, %v725_v50  ;;  %v1097_v48 = vlaneseq }
 0x154   : > { %v2979_v52 = vpop.f32.mrf.mxu0 }
 0x155   : > { %v2990_v59 = vmul.f32 0.05103104, %v2981_v54  ;;  %v3102_v49 = vshrl.u32 %v1097_v48, 7 }
 0x156   : > { %v729_v55 = vpop.f32.mrf.mxu0 }
 0x157   : > { %v2983_v56 = vadd.f32 %v842_v17, %v729_v55  ;;  %v872_v17 = vpop.f32.mrf.mxu1 }
 0x158   : > { %v2985_v57 = vpop.f32.mrf.mxu0 }
 0x159   : > { %v2993_v60 = vmul.f32 0.05103104, %v2983_v56  ;;  %v874_v23 = vpop.f32.mrf.mxu1 }
 0x15a   : > { %v735_v61 = vpop.f32.mrf.mxu0 }
 0x15b   : > { %v906_v62 = vpack.c.bf16 %v2993_v60, %v2990_v59  ;;  %v849_v1 = vadd.f32 %v848_v27, %v735_v61  ;;  %v878_v36 = vpop.f32.mrf.mxu1  ;;  %v913_v61 = vpack.c.bf16 %v833_v45, %v829_v43  ;;  %v1100_v60 = vadd.s32 16, %v3102_v49 }
 0x15c   : > { %v2997_v63 = vpop.f32.mrf.mxu0 }
 0x15d   : > { %v3001_v9 = vmul.f32 0.05103104, %v849_v1 }
 0x15e   : > { %v739_v2 = vpop.f32.mrf.mxu0 }
 0x15f   : > { %v853_v4 = vadd.f32 %v852_v33, %v739_v2 }
 0x160   : > { %v2999_v6 = vpop.f32.mrf.mxu0 }
 0x161   : > { %v3003_v10 = vmul.f32 0.05103104, %v853_v4  ;;  %v915_v37 = vpack.c.bf16 %v853_v4, %v849_v1  ;;  %v911_v4 = vpack.c.bf16 %v2940_v15, %v2936_v11 }
 0x162   : > { %v745_v12 = vpop.f32.mrf.mxu0 }
 0x163   : > { %v907_v13 = vpack.c.bf16 %v3003_v10, %v3001_v9  ;;  %v859_v18 = vadd.f32 %v858_v42, %v745_v12 }
 0x164   : > { %v747_v16 = vpop.f32.mrf.mxu0 }
 0x165   : > { %v3007_v26 = vmul.f32 0.05103104, %v859_v18 }
 0x166   : > { %v749_v19 = vpop.f32.mrf.mxu0 }
 0x167   : > { %v863_v20 = vadd.f32 %v862_v53, %v749_v19  ;;  %v880_v53 = vpop.f32.mrf.mxu1 }
 0x168   : > { %v751_v21 = vpop.f32.mrf.mxu0 }
 0x169   : > { %v3009_v27 = vmul.f32 0.05103104, %v863_v20  ;;  %v916_v28 = vpack.c.bf16 %v863_v20, %v859_v18  ;;  %v882_v20 = vpop.f32.mrf.mxu1  ;;  %v865_v11 = vadd.f32 %v2987_v58, %v751_v21  ;;  %v851_v58 = vadd.f32 %v2951_v30, %v2997_v63 }
 0x16a   : > { %v755_v29 = vpop.f32.mrf.mxu0  ;;  %v835_v30 = vadd.f32 %v2934_v8, %v2969_v46 }
 0x16b   : > { %945 = vrot.lane.b32.xlu1 %v916_v28, %s2705_s25  ;;  %v869_v42 = vadd.f32 %v868_v0, %v755_v29  ;;  %v884_v29 = vpop.f32.mrf.mxu1  ;;  %v3487_v34 = vpack.c.bf16 %v3009_v27, %v3007_v26  ;;  %v1102_v26 = vadd.s32 32, %v3102_v49 }
 0x16c   : > { %v757_v33 = vpop.f32.mrf.mxu0 }
 0x16d   : > { %v3015_v2 = vmul.f32 0.05103104, %v869_v42  ;;  %v871_v32 = vadd.f32 %v870_v7, %v757_v33  ;;  %v914_v7 = vpack.c.bf16 %v2983_v56, %v2981_v54  ;;  %v855_v33 = vadd.f32 %v2961_v38, %v2999_v6 }
 0x16e   : > { %v759_v44 = vpop.f32.mrf.mxu0  ;;  %v841_v54 = vadd.f32 %v2938_v14, %v2979_v52  ;;  %v831_v56 = vadd.f32 %v2932_v5, %v2967_v41 }
 0x16f   : > { %v873_v50 = vadd.f32 %v872_v17, %v759_v44  ;;  %943 = vrot.lane.b32.xlu1 %v915_v37, %s2705_s25  ;;  %v923_v21 = vpack.c.bf16 %v855_v33, %v851_v58  ;;  %v1110_v33 = vadd.s32 96, %v3102_v49 }
 0x170   : > { %v761_v55 = vpop.f32.mrf.mxu0 }
 0x171   : > { %v3017_v12 = vmul.f32 0.05103104, %v873_v50  ;;  %v875_v43 = vadd.f32 %v874_v23, %v761_v55  ;;  %v917_v15 = vpack.c.bf16 %v873_v50, %v869_v42  ;;  %v861_v55 = vadd.f32 %v2971_v47, %v747_v16 }
 0x172   : > { %v765_v18 = vpop.f32.mrf.mxu0  ;;  %v912_v47 = vpack.c.bf16 %v2953_v31, %v2948_v25  ;;  %v845_v16 = vadd.f32 %v2944_v22, %v2985_v57  ;;  %v921_v25 = vpack.c.bf16 %v835_v30, %v831_v56 }
 0x173   : > { %939 = vrot.lane.b32.xlu1 %v913_v61, %s2705_s25  ;;  %v879_v1 = vadd.f32 %v878_v36, %v765_v18  ;;  %v925_v23 = vpack.c.bf16 %v875_v43, %v871_v32  ;;  %v3488_v35 = vpack.c.bf16 %v3017_v12, %v3015_v2  ;;  %v1105_v43 = vadd.s32 56, %v3102_v49 }
 0x174   : > { %v767_v0 = vpop.f32.mrf.mxu0  ;;  %v922_v38 = vpack.c.bf16 %v845_v16, %v841_v54  ;;  %v1111_v54 = vadd.s32 104, %v3102_v49 }
 0x175   : > { %v3025_v45 = vmul.f32 0.05103104, %v879_v1  ;;  %v881_v44 = vadd.f32 %v880_v53, %v767_v0  ;;  %v924_v53 = vpack.c.bf16 %v865_v11, %v861_v55 }
 0x176   : > { %v769_v17 = vpop.f32.mrf.mxu0 }
 0x177   : > { %v883_v28 = vadd.f32 %v882_v20, %v769_v17  ;;  %935 = vrot.lane.b32.xlu1 %v911_v4, %s2705_s25  ;;  %v1104_v20 = vadd.s32 48, %v3102_v49 }
 0x178   : > { %v771_v37 = vpop.f32.mrf.mxu0 }
 0x179   : > { %v3027_v3 = vmul.f32 0.05103104, %v883_v28  ;;  %v885_v19 = vadd.f32 %v884_v29, %v771_v37  ;;  %v918_v61 = vpack.c.bf16 %v883_v28, %v879_v1  ;;  %v1103_v1 = vadd.s32 40, %v3102_v49 }
 0x17b   : > { %v910_v36 = vpack.c.bf16 %v3027_v3, %v3025_v45  ;;  %v926_v18 = vpack.c.bf16 %v885_v19, %v881_v44  ;;  %949 = vrot.lane.b32.xlu0 %v918_v61, %s2705_s25  ;;  %v1106_v45 = vadd.s32 64, %v3102_v49 }
 0x17d   : > { %2312 = vmatprep.subr.bf16.mxu0 %v926_v18 }
 0x17e   : > { %2313 = vmatpush3.bf16.msra.mxu0 %v926_v18  ;;  %v1107_v18 = vadd.s32 72, %v3102_v49 }
 0x17f   : > { %947 = vrot.lane.b32.xlu0 %v917_v15, %s2705_s25  ;;  %2314 = vmatprep.subr.bf16.mxu0 %v925_v23 }
 0x182   : > { %2315 = vmatpush3.bf16.msra.mxu0 %v925_v23 }
 0x183   : > { %941 = vrot.lane.b32.xlu0 %v914_v7, %s2705_s25  ;;  %2316 = vmatprep.subr.bf16.mxu0 %v924_v53  ;;  %v1109_v7 = vadd.s32 88, %v3102_v49 }
 0x186   : > { %2317 = vmatpush3.bf16.msra.mxu0 %v924_v53 }
 0x187   : > { %937 = vrot.lane.b32.xlu0 %v912_v47, %s2705_s25  ;;  %2318 = vmatprep.subr.bf16.mxu0 %v923_v21 }
 0x18a   : > { %2319 = vmatpush3.bf16.msra.mxu0 %v923_v21  ;;  %v1112_v21 = vadd.s32 112, %v3102_v49 }
 0x18b   : > { %2320 = vmatprep.subr.bf16.mxu0 %v922_v38 }
 0x18e   : > { %2321 = vmatpush3.bf16.msra.mxu0 %v922_v38 }
 0x18f   : > { %2322 = vmatprep.subr.bf16.mxu0 %v921_v25 }
 0x192   : > { %2323 = vmatpush3.bf16.msra.mxu0 %v921_v25 }
 0x193   : > { %2324 = vmatprep.subr.bf16.mxu0 %v2965_v40 }
 0x196   : > { %2325 = vmatpush3.bf16.msra.mxu0 %v2965_v40 }
 0x197   : > { %2326 = vmatprep.subr.bf16.mxu0 %v2946_v24 }
 0x19a   : > { %2327 = vmatpush3.bf16.msra.mxu0 %v2946_v24 }
 0x1dd   : > { %v946_v31 = vpop.permute.xlu1 %945 }
 0x1de   : > { %v992_v40 = vsel %vm951_vm0, %v946_v31, 0 }
 0x1e1   : > { %v944_v41 = vpop.permute.xlu1 %943 }
 0x1e2   : > { %v989_v24 = vsel %vm951_vm0, %v944_v41, 0 }
 0x1e5   : > { %v940_v57 = vpop.permute.xlu1 %939 }
 0x1e6   : > { %v983_v63 = vsel %vm951_vm0, %v940_v57, 0 }
 0x1e9   : > { %v936_v42 = vpop.permute.xlu1 %935 }
 0x1ea   : > { %v977_v50 = vsel %vm951_vm0, %v936_v42, 0 }
 0x1ed   : > { %v950_v14 = vpop.permute.xlu0 %949 }
 0x1ee   : > { %v998_v8 = vsel %vm951_vm0, %v950_v14, 0  ;;  %2368 = vmatprep.subr.msk.bf16.mxu1 %vm951_vm0, %v950_v14  ;;  %v1113_v14 = vadd.s32 120, %v3102_v49 }
 0x1ef   : > { %2281 = vmatpush3.bf16.xpose.msra.mxu1 %v998_v8 }
 0x1f1   : > { %v948_v5 = vpop.permute.xlu0 %947 }
 0x1f2   : > { %2369 = vmatprep.subr.msk.bf16.mxu1 %vm951_vm0, %v948_v5  ;;  %v995_v22 = vsel %vm951_vm0, %v948_v5, 0 }
 0x1f5   : > { %v942_v46 = vpop.permute.xlu0 %941 }
 0x1f6   : > { %v986_v52 = vsel %vm951_vm0, %v942_v46, 0 }
 0x1f7   : > { %2283 = vmatpush3.bf16.xpose.msra.mxu1 %v995_v22 }
 0x1f8   : > { %2370 = vmatprep.subr.msk.bf16.mxu1 %vm951_vm0, %v946_v31 }
 0x1f9   : > { %v938_v6 = vpop.permute.xlu0 %937 }
 0x1fa   : > { %v980_v32 = vsel %vm951_vm0, %v938_v6, 0 }
 0x1ff   : > { %2285 = vmatpush3.bf16.xpose.msra.mxu1 %v992_v40 }
 0x200   : > { %2371 = vmatprep.subr.msk.bf16.mxu1 %vm951_vm0, %v944_v41 }
 0x207   : > { %2287 = vmatpush3.bf16.xpose.msra.mxu1 %v989_v24 }
 0x208   : > { %2372 = vmatprep.subr.msk.bf16.mxu1 %vm951_vm0, %v942_v46 }
 0x20f   : > { %2289 = vmatpush3.bf16.xpose.msra.mxu1 %v986_v52 }
 0x210   : > { %2373 = vmatprep.subr.msk.bf16.mxu1 %vm951_vm0, %v940_v57 }
 0x217   : > { %2291 = vmatpush3.bf16.xpose.msra.mxu1 %v983_v63 }
 0x218   : > { %2374 = vmatprep.subr.msk.bf16.mxu1 %vm951_vm0, %v938_v6 }
 0x21f   : > { %2293 = vmatpush3.bf16.xpose.msra.mxu1 %v980_v32 }
 0x220   : > { %2375 = vmatprep.subr.msk.bf16.mxu1 %vm951_vm0, %v936_v42 }
 0x227   : > { %2295 = vmatpush3.bf16.xpose.msra.mxu1 %v977_v50 }
 0x22e   : > { %2297 = vmatmul.mubr.msk.bf16.vlgmr.msra.gmra.mxu1 %vm951_vm0, %v904_v39  ;;  %v3489_v39 = vmov 0  }
 0x22f   : > { %2300 = vmatprep.mubr.msk.bf16.mxu1 %vm951_vm0, %v905_v51  ;;  %v3104_v51 = vand.u32 127, %v1097_v48 }
 0x231   : > { %vm1116_vm1 = vcmp.le.s32.totalorder %v3104_v51, %v3102_v49  ;;  %vm1118_vm2 = vcmp.le.s32.totalorder %v3104_v51, %v1100_v60  ;;  %vm1120_vm5 = vcmp.le.s32.totalorder %v3104_v51, %v1102_v26  ;;  %vm1122_vm6 = vcmp.le.s32.totalorder %v3104_v51, %v1104_v20 }
 0x232   : > { %vm1121_vm7 = vcmp.le.s32.totalorder %v3104_v51, %v1103_v1  ;;  %vm1123_vm8 = vcmp.le.s32.totalorder %v3104_v51, %v1105_v43  ;;  %vm1124_vm9 = vcmp.le.s32.totalorder %v3104_v51, %v1106_v45  ;;  %vm1125_vm11 = vcmp.le.s32.totalorder %v3104_v51, %v1107_v18 }
 0x233   : > { %vm1127_vm12 = vcmp.le.s32.totalorder %v3104_v51, %v1109_v7  ;;  %vm1128_vm13 = vcmp.le.s32.totalorder %v3104_v51, %v1110_v33  ;;  %vm1130_vm14 = vcmp.le.s32.totalorder %v3104_v51, %v1112_v21  ;;  %vm1129_vm15 = vcmp.le.s32.totalorder %v3104_v51, %v1111_v54 }
 0x236   : > { %2301 = vmatmul.mubr.msk.bf16.gmra.mxu1 %vm951_vm0, %v906_v62  ;;  %v1099_v62 = vadd.s32 8, %v3102_v49 }
 0x237   : > { %2304 = vmatprep.mubr.msk.bf16.mxu1 %vm951_vm0, %v907_v13  ;;  %v1101_v13 = vadd.s32 24, %v3102_v49 }
 0x238   : > { %vm1117_vm3 = vcmp.le.s32.totalorder %v3104_v51, %v1099_v62 }
 0x239   : > { %vm1119_vm4 = vcmp.le.s32.totalorder %v3104_v51, %v1101_v13 }
 0x23e   : > { %2305 = vmatmul.mubr.msk.bf16.gmra.mxu1 %vm951_vm0, %v3487_v34 }
 0x23f   : > { %2308 = vmatprep.mubr.msk.bf16.mxu1 %vm951_vm0, %v3488_v35 }
 0x246   : > { %2309 = vmatmul.mubr.msk.bf16.gmra.mxu1 %vm951_vm0, %v910_v36  ;;  %v1108_v36 = vadd.s32 80, %v3102_v49 }
 0x247   : > { %1589 = vmatprep.mubr.bf16.mxu1 %v3489_v39 }
 0x248   : > { %vm1126_vm10 = vcmp.le.s32.totalorder %v3104_v51, %v1108_v36 }
 0x2ee   : > { %v2298_v59 = vpop.f32.mrf.mxu1 }
 0x2ef   : > { %v3117_v2 = vsel %vm1118_vm2, %v2298_v59, -inf }
 0x2f0   : > { %v1034_v9 = vpop.f32.mrf.mxu1 }
 0x2f1   : > { %v3110_v10 = vsel %vm1116_vm1, %v1034_v9, -inf  ;;  %vm1131_vm1 = vcmp.le.s32.totalorder %v3104_v51, %v1113_v14 }
 0x2f2   : > { %1148 = vmax.xlane.f32.xlu0 %v3110_v10  ;;  %v2299_v3 = vpop.f32.mrf.mxu1 }
 0x2f3   : > { %v3127_v4 = vsel %vm1119_vm4, %v2299_v3, -inf }
 0x2f4   : > { %v1037_v27 = vpop.f32.mrf.mxu1 }
 0x2f5   : > { %v3119_v12 = vsel %vm1117_vm3, %v1037_v27, -inf }
 0x2f6   : > { %1152 = vmax.xlane.f32.xlu0 %v3117_v2  ;;  %1150 = vmax.xlane.f32.xlu1 %v3119_v12  ;;  %v2302_v19 = vpop.f32.mrf.mxu1 }
 0x2f7   : > { %v3137_v37 = vsel %vm1122_vm6, %v2302_v19, -inf }
 0x2f8   : > { %v1050_v0 = vpop.f32.mrf.mxu1 }
 0x2f9   : > { %v3129_v17 = vsel %vm1120_vm5, %v1050_v0, -inf }
 0x2fa   : > { %1154 = vmax.xlane.f32.xlu0 %v3127_v4  ;;  %1156 = vmax.xlane.f32.xlu1 %v3129_v17  ;;  %v2303_v28 = vpop.f32.mrf.mxu1 }
 0x2fb   : > { %v3147_v15 = vsel %vm1123_vm8, %v2303_v28, -inf }
 0x2fc   : > { %v1053_v29 = vpop.f32.mrf.mxu1 }
 0x2fd   : > { %v3139_v44 = vsel %vm1121_vm7, %v1053_v29, -inf }
 0x2fe   : > { %1160 = vmax.xlane.f32.xlu1 %v3137_v37  ;;  %1158 = vmax.xlane.f32.xlu0 %v3139_v44  ;;  %v2306_v61 = vpop.f32.mrf.mxu1 }
 0x2ff   : > { %v3157_v58 = vsel %vm1126_vm10, %v2306_v61, -inf }
 0x300   : > { %v1066_v11 = vpop.f32.mrf.mxu1 }
 0x301   : > { %v3149_v23 = vsel %vm1124_vm9, %v1066_v11, -inf }
 0x302   : > { %1162 = vmax.xlane.f32.xlu0 %v3147_v15  ;;  %1164 = vmax.xlane.f32.xlu1 %v3149_v23  ;;  %v2307_v55 = vpop.f32.mrf.mxu1 }
 0x303   : > { %v3167_v38 = vsel %vm1127_vm12, %v2307_v55, -inf }
 0x304   : > { %v1069_v53 = vpop.f32.mrf.mxu1 }
 0x305   : > { %v3159_v47 = vsel %vm1125_vm11, %v1069_v53, -inf }
 0x306   : > { %1168 = vmax.xlane.f32.xlu1 %v3157_v58  ;;  %1166 = vmax.xlane.f32.xlu0 %v3159_v47  ;;  %v2310_v16 = vpop.f32.mrf.mxu1 }
 0x307   : > { %v3176_v5 = vsel %vm1130_vm14, %v2310_v16, -inf }
 0x308   : > { %v1082_v30 = vpop.f32.mrf.mxu1 }
 0x309   : > { %v3169_v56 = vsel %vm1128_vm13, %v1082_v30, -inf }
 0x30a   : > { %1170 = vmax.xlane.f32.xlu0 %v3167_v38  ;;  %1172 = vmax.xlane.f32.xlu1 %v3169_v56  ;;  %v2311_v25 = vpop.f32.mrf.mxu1 }
 0x30b   : > { %v3183_v31 = vsel %vm1131_vm1, %v2311_v25, -inf }
 0x30c   : > { %v1085_v8 = vpop.f32.mrf.mxu1 }
 0x30d   : > { %v3178_v22 = vsel %vm1129_vm15, %v1085_v8, -inf }
 0x30e   : > { %1176 = vmax.xlane.f32.xlu1 %v3176_v5  ;;  %1174 = vmax.xlane.f32.xlu0 %v3178_v22 }
 0x312   : > { %1178 = vmax.xlane.f32.xlu0 %v3183_v31 }
 0x37b   : > { %v1149_v40 = vpop.xlane.xlu0 %1148 }
 0x37c   : > { %v1180_v41 = vsub.f32 %v3110_v10, %v1149_v40 }
 0x37e   : > { %v1196_v24 = vmul.f32 1.442695, %v1180_v41 }
 0x37f   : > { %v1153_v46 = vpop.xlane.xlu0 %1152  ;;  %v1151_v52 = vpop.xlane.xlu1 %1150 }
 0x380   : > { %2545 = vpow2.f32 %v1196_v24  ;;  %v1182_v57 = vsub.f32 %v3117_v2, %v1153_v46  ;;  %v1181_v63 = vsub.f32 %v3119_v12, %v1151_v52  ;;  %v2529_v24 = vld [vmem:[%s2823_s6 + $0x48] ss:$12 sps:$4 sm:$0xff]   ;;  %v2531_v46 = vld [vmem:[%s2823_s6 + $0x4c] ss:$12 sps:$4 sm:$0xff]  }
 0x381   : > { %v2534_v52 = vld [vmem:[%s2823_s6 + $0x34] ss:$12 sps:$4 sm:$0xff]   ;;  %1565 = vmatprep.subr.bf16.mxu1 %v2531_v46 }
 0x382   : > { %v1200_v6 = vmul.f32 1.442695, %v1182_v57  ;;  %v1198_v32 = vmul.f32 1.442695, %v1181_v63  ;;  %v2538_v57 = vld [vmem:[%s2823_s6 + $0x50] ss:$12 sps:$4 sm:$0xff]   ;;  %1566 = vmatpush1.bf16.msra.mxu1 %v2529_v24 }
 0x383   : > { %v1155_v42 = vpop.xlane.xlu0 %1154  ;;  %v1157_v50 = vpop.xlane.xlu1 %1156  ;;  %v2532_v63 = vld [vmem:[%s2823_s6 + $0x30] ss:$12 sps:$4 sm:$0xff]   ;;  %1567 = vmatprep.subr.bf16.mxu1 %v2534_v52  ;;  %2344 = vmatprep.subr.bf16.mxu0 %v2538_v57 }
 0x384   : > { %2547 = vpow2.f32 %v1200_v6  ;;  %v1183_v34 = vsub.f32 %v3127_v4, %v1155_v42  ;;  %v1184_v35 = vsub.f32 %v3129_v17, %v1157_v50  ;;  %v2537_v6 = vld [vmem:[%s2823_s6 + $0x1c] ss:$12 sps:$4 sm:$0xff]  }
 0x385   : > { %2549 = vpow2.f32 %v1198_v32  ;;  %v2535_v32 = vld [vmem:[%s2823_s6 + $0x18] ss:$12 sps:$4 sm:$0xff]  }
 0x386   : > { %v1202_v48 = vmul.f32 1.442695, %v1183_v34  ;;  %v1204_v51 = vmul.f32 1.442695, %v1184_v35  ;;  %1568 = vmatpush1.bf16.msra.mxu1 %v2532_v63 }
 0x387   : > { %v1161_v59 = vpop.xlane.xlu1 %1160  ;;  %v1159_v60 = vpop.xlane.xlu0 %1158  ;;  %1569 = vmatprep.subr.bf16.mxu1 %v2537_v6 }
 0x388   : > { %2551 = vpow2.f32 %v1202_v48  ;;  %v1186_v62 = vsub.f32 %v3137_v37, %v1161_v59  ;;  %v1185_v9 = vsub.f32 %v3139_v44, %v1159_v60 }
 0x389   : > { %2553 = vpow2.f32 %v1204_v51 }
 0x38a   : > { %v1208_v10 = vmul.f32 1.442695, %v1186_v62  ;;  %v1206_v3 = vmul.f32 1.442695, %v1185_v9  ;;  %1570 = vmatpush1.bf16.msra.mxu1 %v2535_v32  ;;  %v2540_v32 = vld [vmem:[%s2823_s6] ss:$12 sps:$4 sm:$0xff]  }
 0x38b   : > { %v1163_v13 = vpop.xlane.xlu0 %1162  ;;  %v1165_v26 = vpop.xlane.xlu1 %1164 }
 0x38c   : > { %2555 = vpow2.f32 %v1208_v10  ;;  %v1187_v27 = vsub.f32 %v3147_v15, %v1163_v13  ;;  %v1188_v2 = vsub.f32 %v3149_v23, %v1165_v26 }
 0x38d   : > { %v3195_v12 = vpop.eup %2545  ;;  %2557 = vpow2.f32 %v1206_v3 }
 0x38e   : > { %v1210_v19 = vmul.f32 1.442695, %v1187_v27  ;;  %v1212_v20 = vmul.f32 1.442695, %v1188_v2  ;;  %1228 = vadd.xlane.f32.xlu1 %v3195_v12 }
 0x38f   : > { %v1169_v1 = vpop.xlane.xlu1 %1168  ;;  %v1167_v0 = vpop.xlane.xlu0 %1166 }
 0x390   : > { %2559 = vpow2.f32 %v1210_v19  ;;  %v1190_v4 = vsub.f32 %v3157_v58, %v1169_v1  ;;  %v1189_v17 = vsub.f32 %v3159_v47, %v1167_v0 }
 0x391   : > { %v3200_v28 = vpop.eup %2547  ;;  %2561 = vpow2.f32 %v1212_v20 }
 0x392   : > { %v3202_v43 = vpop.eup %2549  ;;  %v1216_v45 = vmul.f32 1.442695, %v1190_v4  ;;  %v1214_v29 = vmul.f32 1.442695, %v1189_v17  ;;  %1232 = vadd.xlane.f32.xlu1 %v3200_v28 }
 0x393   : > { %1230 = vadd.xlane.f32.xlu0 %v3202_v43  ;;  %v1171_v37 = vpop.xlane.xlu0 %1170  ;;  %v1173_v44 = vpop.xlane.xlu1 %1172 }
 0x394   : > { %2563 = vpow2.f32 %v1216_v45  ;;  %v1191_v61 = vsub.f32 %v3167_v38, %v1171_v37  ;;  %v1192_v36 = vsub.f32 %v3169_v56, %v1173_v44 }
 0x395   : > { %v3208_v18 = vpop.eup %2551  ;;  %2565 = vpow2.f32 %v1214_v29 }
 0x396   : > { %v3210_v11 = vpop.eup %2553  ;;  %v1218_v15 = vmul.f32 1.442695, %v1191_v61  ;;  %v1220_v23 = vmul.f32 1.442695, %v1192_v36 }
 0x397   : > { %1236 = vadd.xlane.f32.xlu1 %v3210_v11  ;;  %1234 = vadd.xlane.f32.xlu0 %v3208_v18  ;;  %v1177_v55 = vpop.xlane.xlu1 %1176  ;;  %v1175_v7 = vpop.xlane.xlu0 %1174 }
 0x398   : > { %2567 = vpow2.f32 %v1218_v15  ;;  %v1194_v33 = vsub.f32 %v3176_v5, %v1177_v55  ;;  %v1193_v53 = vsub.f32 %v3178_v22, %v1175_v7 }
 0x399   : > { %v3216_v58 = vpop.eup %2555  ;;  %2569 = vpow2.f32 %v1220_v23 }
 0x39a   : > { %v3218_v47 = vpop.eup %2557  ;;  %v1224_v16 = vmul.f32 1.442695, %v1194_v33  ;;  %v1222_v21 = vmul.f32 1.442695, %v1193_v53 }
 0x39b   : > { %1240 = vadd.xlane.f32.xlu1 %v3216_v58  ;;  %1238 = vadd.xlane.f32.xlu0 %v3218_v47  ;;  %v1179_v54 = vpop.xlane.xlu0 %1178 }
 0x39c   : > { %2571 = vpow2.f32 %v1224_v16  ;;  %v1195_v30 = vsub.f32 %v3183_v31, %v1179_v54 }
 0x39d   : > { %v3223_v38 = vpop.eup %2559  ;;  %2573 = vpow2.f32 %v1222_v21 }
 0x39e   : > { %v3225_v56 = vpop.eup %2561  ;;  %v1226_v25 = vmul.f32 1.442695, %v1195_v30 }
 0x39f   : > { %1244 = vadd.xlane.f32.xlu1 %v3225_v56  ;;  %1242 = vadd.xlane.f32.xlu0 %v3223_v38 }
 0x3a0   : > { %2575 = vpow2.f32 %v1226_v25 }
 0x3a1   : > { %v3229_v14 = vpop.eup %2563 }
 0x3a2   : > { %v3231_v8 = vpop.eup %2565 }
 0x3a3   : > { %1248 = vadd.xlane.f32.xlu1 %v3229_v14  ;;  %1246 = vadd.xlane.f32.xlu0 %v3231_v8 }
 0x3a5   : > { %v3235_v5 = vpop.eup %2567 }
 0x3a6   : > { %v3237_v22 = vpop.eup %2569 }
 0x3a7   : > { %1252 = vadd.xlane.f32.xlu1 %v3237_v22  ;;  %1250 = vadd.xlane.f32.xlu0 %v3235_v5 }
 0x3a9   : > { %v3241_v31 = vpop.eup %2571 }
 0x3aa   : > { %v3243_v40 = vpop.eup %2573 }
 0x3ab   : > { %1256 = vadd.xlane.f32.xlu1 %v3241_v31  ;;  %1254 = vadd.xlane.f32.xlu0 %v3243_v40 }
 0x3ad   : > { %v3247_v41 = vpop.eup %2575 }
 0x3af   : > { %1258 = vadd.xlane.f32.xlu0 %v3247_v41 }
 0x417   : > { %v1229_v42 = vpop.xlane.xlu1 %1228 }
 0x418   : > { %2577 = vrcp.f32 %v1229_v42  ;;  %v2542_v42 = vld [vmem:[%s2823_s6 + $0x4] ss:$12 sps:$4 sm:$0xff]  }
 0x419   : > { %1571 = vmatprep.subr.bf16.mxu1 %v2542_v42  ;;  %v1420_v42 = vld [vmem:[#allocation2 + $0x168] sm:$0xff] }
 0x41a   : > { %1572 = vmatpush1.bf16.msra.mxu1 %v2540_v32 }
 0x41b   : > { %v1233_v50 = vpop.xlane.xlu1 %1232 }
 0x41c   : > { %v1231_v34 = vpop.xlane.xlu0 %1230 }
 0x41d   : > { %2579 = vrcp.f32 %v1231_v34 }
 0x41e   : > { %2581 = vrcp.f32 %v1233_v50  ;;  %v2543_v50 = vld [vmem:[%s2823_s6 + $0x20] ss:$12 sps:$4 sm:$0xff]  }
 0x420   : > { %v1237_v35 = vpop.xlane.xlu1 %1236  ;;  %v1235_v48 = vpop.xlane.xlu0 %1234 }
 0x421   : > { %2583 = vrcp.f32 %v1235_v48 }
 0x422   : > { %2585 = vrcp.f32 %v1237_v35 }
 0x424   : > { %v1241_v51 = vpop.xlane.xlu1 %1240  ;;  %v1239_v59 = vpop.xlane.xlu0 %1238 }
 0x425   : > { %2587 = vrcp.f32 %v1239_v59  ;;  %v2578_v60 = vpop.eup %2577 }
 0x426   : > { %2589 = vrcp.f32 %v1241_v51  ;;  %v1276_v3 = vmul.f32 %v2578_v60, %v3195_v12 }
 0x428   : > { %v1245_v62 = vpop.xlane.xlu1 %1244  ;;  %v1243_v9 = vpop.xlane.xlu0 %1242 }
 0x429   : > { %2591 = vrcp.f32 %v1243_v9 }
 0x42a   : > { %v2580_v10 = vpop.eup %2579  ;;  %2593 = vrcp.f32 %v1245_v62 }
 0x42b   : > { %v1277_v13 = vmul.f32 %v2580_v10, %v3202_v43  ;;  %v2582_v2 = vpop.eup %2581  ;;  %v2539_v43 = vld [vmem:[%s2823_s6 + $0x38] ss:$12 sps:$4 sm:$0xff]  }
 0x42c   : > { %v1249_v26 = vpop.xlane.xlu1 %1248  ;;  %v1247_v27 = vpop.xlane.xlu0 %1246  ;;  %v1278_v4 = vmul.f32 %v2582_v2, %v3200_v28 }
 0x42d   : > { %v1292_v19 = vpack.c.bf16 %v1277_v13, %v1276_v3  ;;  %2595 = vrcp.f32 %v1247_v27 }
 0x42e   : > { %v2584_v20 = vpop.eup %2583  ;;  %2597 = vrcp.f32 %v1249_v26 }
 0x42f   : > { %2328 = vmatprep.mubr.bf16.mxu0 %v1292_v19  ;;  %v1279_v17 = vmul.f32 %v2584_v20, %v3208_v18  ;;  %v2586_v45 = vpop.eup %2585 }
 0x430   : > { %v1253_v1 = vpop.xlane.xlu1 %1252  ;;  %v1251_v0 = vpop.xlane.xlu0 %1250  ;;  %v1280_v61 = vmul.f32 %v2586_v45, %v3210_v11 }
 0x431   : > { %2599 = vrcp.f32 %v1251_v0  ;;  %v1293_v12 = vpack.c.bf16 %v1279_v17, %v1278_v4 }
 0x432   : > { %v2588_v29 = vpop.eup %2587  ;;  %2601 = vrcp.f32 %v1253_v1 }
 0x433   : > { %2329 = vmatmul.mubr.bf16.vlgmr.msra.gmra.mxu0 %v1293_v12  ;;  %v1281_v36 = vmul.f32 %v2588_v29, %v3218_v47  ;;  %v2590_v15 = vpop.eup %2589  ;;  %v1397_v12 = vld [vmem:[#allocation2 + $0xb0] sm:$0xff] }
 0x434   : > { %v1257_v37 = vpop.xlane.xlu1 %1256  ;;  %v1255_v44 = vpop.xlane.xlu0 %1254  ;;  %2345 = vmatpush3.bf16.msra.mxu0 %v2538_v57  ;;  %v1282_v55 = vmul.f32 %v2590_v15, %v3216_v58 }
 0x435   : > { %2603 = vrcp.f32 %v1255_v44  ;;  %v1294_v23 = vpack.c.bf16 %v1281_v36, %v1280_v61  ;;  %2346 = vmatprep.subr.bf16.mxu0 %v2539_v43  ;;  %v1399_v36 = vld [vmem:[#allocation2 + $0x10] sm:$0xff] }
 0x436   : > { %v2592_v28 = vpop.eup %2591  ;;  %2605 = vrcp.f32 %v1257_v37  ;;  %v1398_v37 = vld [vmem:[#allocation2 + $0xd0] sm:$0xff] }
 0x437   : > { %2332 = vmatprep.mubr.bf16.mxu0 %v1294_v23  ;;  %v1283_v7 = vmul.f32 %v2592_v28, %v3223_v38  ;;  %v2594_v33 = vpop.eup %2593  ;;  %v1400_v28 = vld [vmem:[#allocation2 + $0x48] sm:$0xff] }
 0x438   : > { %v1259_v18 = vpop.xlane.xlu0 %1258  ;;  %2347 = vmatpush3.bf16.msra.mxu0 %v2539_v43  ;;  %v1284_v47 = vmul.f32 %v2594_v33, %v3225_v56  ;;  %v1405_v43 = vld [vmem:[#allocation2 + $0x108] sm:$0xff] }
 0x439   : > { %2607 = vrcp.f32 %v1259_v18  ;;  %v1295_v53 = vpack.c.bf16 %v1283_v7, %v1282_v55  ;;  %2348 = vmatprep.subr.bf16.mxu0 %v2543_v50  ;;  %v1408_v7 = vld [vmem:[#allocation2 + $0x118] sm:$0xff] }
 0x43a   : > { %v2596_v11 = vpop.eup %2595 }
 0x43b   : > { %2333 = vmatmul.mubr.bf16.gmra.mxu0 %v1295_v53  ;;  %v1285_v16 = vmul.f32 %v2596_v11, %v3231_v8  ;;  %v2598_v21 = vpop.eup %2597 }
 0x43c   : > { %v1286_v25 = vmul.f32 %v2598_v21, %v3229_v14  ;;  %2349 = vmatpush3.bf16.msra.mxu0 %v2543_v50 }
 0x43d   : > { %v1296_v54 = vpack.c.bf16 %v1285_v16, %v1284_v47  ;;  %v1402_v16 = vld [vmem:[#allocation2 + $0x128] sm:$0xff] }
 0x43e   : > { %v2600_v30 = vpop.eup %2599 }
 0x43f   : > { %2336 = vmatprep.mubr.bf16.mxu0 %v1296_v54  ;;  %v1287_v58 = vmul.f32 %v2600_v30, %v3235_v5  ;;  %v2602_v38 = vpop.eup %2601  ;;  %v1403_v30 = vld [vmem:[#allocation2 + $0x40] sm:$0xff] }
 0x440   : > { %v1288_v56 = vmul.f32 %v2602_v38, %v3237_v22  ;;  %v2544_v22 = vld [vmem:[%s2823_s6 + $0x8] ss:$12 sps:$4 sm:$0xff]   ;;  %v1417_v38 = vld [vmem:[#allocation2 + $0xe0] sm:$0xff] }
 0x441   : > { %v1297_v24 = vpack.c.bf16 %v1287_v58, %v1286_v25  ;;  %2350 = vmatprep.subr.bf16.mxu0 %v2544_v22 }
 0x442   : > { %v2604_v46 = vpop.eup %2603  ;;  %2351 = vmatpush3.bf16.msra.mxu0 %v2544_v22 }
 0x443   : > { %v2606_v52 = vpop.eup %2605  ;;  %2337 = vmatmul.mubr.bf16.gmra.mxu0 %v1297_v24  ;;  %v1289_v8 = vmul.f32 %v2604_v46, %v3243_v40 }
 0x444   : > { %v1290_v6 = vmul.f32 %v2606_v52, %v3241_v31  ;;  %v1404_v52 = vld [vmem:[#allocation2 + $0x178] sm:$0xff] }
 0x445   : > { %v1298_v63 = vpack.c.bf16 %v1289_v8, %v1288_v56 }
 0x446   : > { %v2608_v57 = vpop.eup %2607 }
 0x447   : > { %v1291_v14 = vmul.f32 %v2608_v57, %v3247_v41  ;;  %2340 = vmatprep.mubr.bf16.mxu0 %v1298_v63  ;;  %v1411_v57 = vld [vmem:[#allocation2 + $0x58] sm:$0xff] }
 0x449   : > { %v1299_v5 = vpack.c.bf16 %v1291_v14, %v1290_v6  ;;  %v1406_v14 = vld [vmem:[#allocation2 + $0x110] sm:$0xff] }
 0x44b   : > { %2341 = vmatmul.mubr.bf16.gmra.mxu0 %v1299_v5 }
 0x4f3   : > { %v2330_v40 = vpop.f32.mrf.mxu0 }
 0x4f5   : > { %v1334_v34 = vpop.f32.mrf.mxu0 }
 0x4f7   : > { %v2331_v35 = vpop.f32.mrf.mxu0 }
 0x4f8   : > { %v1446_v51 = vpack.c.bf16 %v2331_v35, %v2330_v40  ;;  %v1407_v40 = vld [vmem:[#allocation2 + $0x90] sm:$0xff] }
 0x4f9   : > { %v1337_v48 = vpop.f32.mrf.mxu0 }
 0x4fa   : > { %v1445_v31 = vpack.c.bf16 %v1337_v48, %v1334_v34  ;;  %v1414_v48 = vld [vmem:[#allocation2 + $0x130] sm:$0xff] }
 0x4fb   : > { %v2334_v41 = vpop.f32.mrf.mxu0 }
 0x4fc   : > { %2216 = vmatmul.mubr.msk.bf16.vlgmr.msra.gmra.mxu1 %vm951_vm0, %v1445_v31  ;;  %2352 = vmatprep.mubr.msk.bf16.mxu0 %vm951_vm0, %v1445_v31 }
 0x4fd   : > { %v1350_v59 = vpop.f32.mrf.mxu0  ;;  %2353 = vmatmul.mubr.msk.bf16.vlgmr.msra.gmra.mxu0 %vm951_vm0, %v1446_v51  ;;  %1599 = vmatprep.mubr.bf16.mxu1 %v3489_v39 }
 0x4ff   : > { %v2335_v60 = vpop.f32.mrf.mxu0 }
 0x500   : > { %v1448_v10 = vpack.c.bf16 %v2335_v60, %v2334_v41  ;;  %v1409_v41 = vld [vmem:[#allocation2 + $0x148] sm:$0xff] }
 0x501   : > { %v1353_v62 = vpop.f32.mrf.mxu0 }
 0x502   : > { %v1447_v9 = vpack.c.bf16 %v1353_v62, %v1350_v59  ;;  %v1429_v62 = vld [vmem:[#allocation2 + $0x60] sm:$0xff] }
 0x503   : > { %v2338_v3 = vpop.f32.mrf.mxu0 }
 0x504   : > { %2217 = vmatmul.mubr.msk.bf16.gmra.mxu1 %vm951_vm0, %v1446_v51  ;;  %2356 = vmatprep.mubr.msk.bf16.mxu0 %vm951_vm0, %v1447_v9 }
 0x505   : > { %v1366_v13 = vpop.f32.mrf.mxu0  ;;  %2357 = vmatmul.mubr.msk.bf16.gmra.mxu0 %vm951_vm0, %v1448_v10  ;;  %1609 = vmatprep.mubr.bf16.mxu1 %v3489_v39 }
 0x507   : > { %v2339_v26 = vpop.f32.mrf.mxu0 }
 0x508   : > { %v1450_v19 = vpack.c.bf16 %v2339_v26, %v2338_v3  ;;  %v1410_v3 = vld [vmem:[#allocation2 + $0x100] sm:$0xff] }
 0x509   : > { %v1369_v27 = vpop.f32.mrf.mxu0 }
 0x50a   : > { %v1449_v2 = vpack.c.bf16 %v1369_v27, %v1366_v13  ;;  %v1423_v27 = vld [vmem:[#allocation2 + $0x20] sm:$0xff] }
 0x50b   : > { %v2342_v20 = vpop.f32.mrf.mxu0 }
 0x50c   : > { %2218 = vmatmul.mubr.msk.bf16.gmra.mxu1 %vm951_vm0, %v1447_v9  ;;  %2360 = vmatprep.mubr.msk.bf16.mxu0 %vm951_vm0, %v1449_v2 }
 0x50d   : > { %v1382_v1 = vpop.f32.mrf.mxu0  ;;  %2361 = vmatmul.mubr.msk.bf16.gmra.mxu0 %vm951_vm0, %v1450_v19  ;;  %1619 = vmatprep.mubr.bf16.mxu1 %v3489_v39 }
 0x50f   : > { %v2343_v0 = vpop.f32.mrf.mxu0 }
 0x510   : > { %v1452_v45 = vpack.c.bf16 %v2343_v0, %v2342_v20  ;;  %v1412_v20 = vld [vmem:[#allocation2 + $0xd8] sm:$0xff] }
 0x511   : > { %v1385_v4 = vpop.f32.mrf.mxu0 }
 0x512   : > { %v1451_v17 = vpack.c.bf16 %v1385_v4, %v1382_v1  ;;  %v1432_v4 = vld [vmem:[#allocation2 + $0x38] sm:$0xff] }
 0x514   : > { %2219 = vmatmul.mubr.msk.bf16.gmra.mxu1 %vm951_vm0, %v1448_v10  ;;  %2364 = vmatprep.mubr.msk.bf16.mxu0 %vm951_vm0, %v1451_v17 }
 0x515   : > { %2365 = vmatmul.mubr.msk.bf16.gmra.mxu0 %vm951_vm0, %v1452_v45  ;;  %1629 = vmatprep.mubr.bf16.mxu1 %v3489_v39 }
 0x51c   : > { %2220 = vmatmul.mubr.msk.bf16.gmra.mxu1 %vm951_vm0, %v1449_v2 }
 0x51d   : > { %1639 = vmatprep.mubr.bf16.mxu1 %v3489_v39 }
 0x524   : > { %2221 = vmatmul.mubr.msk.bf16.gmra.mxu1 %vm951_vm0, %v1450_v19 }
 0x525   : > { %1649 = vmatprep.mubr.bf16.mxu1 %v3489_v39 }
 0x52c   : > { %2222 = vmatmul.mubr.msk.bf16.gmra.mxu1 %vm951_vm0, %v1451_v17 }
 0x52d   : > { %1659 = vmatprep.mubr.bf16.mxu1 %v3489_v39  ;;  %v1401_v39 = vld [vmem:[#allocation2 + $0x160] sm:$0xff] }
 0x534   : > { %2223 = vmatmul.mubr.msk.bf16.gmra.mxu1 %vm951_vm0, %v1452_v45 }
 0x5bc   : > { %v1591_v29 = vpop.f32.mrf.mxu1 }
 0x5bd   : > { %v1767_v44 = vadd.f32 %v1591_v29, %v1397_v12  ;;  %v2354_v61 = vpop.f32.mrf.mxu0  ;;  %v1413_v12 = vld [vmem:[#allocation2 + $0x80] sm:$0xff] }
 0x5be   : > { %v1775_v15 = vadd.f32 %v2354_v61, %v1405_v43  ;;  %v1593_v23 = vpop.f32.mrf.mxu1 }
 0x5bf   : > { %1815 = vst [vmem:[#allocation2 + $0xb0] sm:$0xff] %v1767_v44  ;;  %v1768_v18 = vadd.f32 %v1593_v23, %v1398_v37  ;;  %v1704_v55 = vpop.f32.mrf.mxu0  ;;  %v1426_v37 = vld [vmem:[#allocation2 + $0x170] sm:$0xff] }
 0x5c0   : > { %1823 = vst [vmem:[#allocation2 + $0x108] sm:$0xff] %v1775_v15  ;;  %v1769_v33 = vadd.f32 %v1704_v55, %v1399_v36  ;;  %v1595_v53 = vpop.f32.mrf.mxu1  ;;  %v1415_v36 = vld [vmem:[#allocation2 + $0x138] sm:$0xff] }
 0x5c1   : > { %1816 = vst [vmem:[#allocation2 + $0xd0] sm:$0xff] %v1768_v18  ;;  %v1770_v11 = vadd.f32 %v1595_v53, %v1400_v28  ;;  %v2355_v47 = vpop.f32.mrf.mxu0  ;;  %v1441_v28 = vld [vmem:[#allocation2 + $0x70] sm:$0xff] }
 0x5c2   : > { %1817 = vst [vmem:[#allocation2 + $0x10] sm:$0xff] %v1769_v33  ;;  %v1778_v21 = vadd.f32 %v2355_v47, %v1408_v7  ;;  %v1597_v54 = vpop.f32.mrf.mxu1  ;;  %v1416_v7 = vld [vmem:[#allocation2 + $0x120] sm:$0xff] }
 0x5c3   : > { %1818 = vst [vmem:[#allocation2 + $0x48] sm:$0xff] %v1770_v11  ;;  %v1771_v25 = vadd.f32 %v1597_v54, %v1401_v39  ;;  %v1707_v58 = vpop.f32.mrf.mxu0  ;;  %v1435_v39 = vld [vmem:[#allocation2 + $0x98] sm:$0xff] }
 0x5c4   : > { %1826 = vst [vmem:[#allocation2 + $0x118] sm:$0xff] %v1778_v21  ;;  %v1772_v24 = vadd.f32 %v1707_v58, %v1402_v16  ;;  %v1601_v46 = vpop.f32.mrf.mxu1  ;;  %v1418_v16 = vld [vmem:[#allocation2 + $0xa8] sm:$0xff] }
 0x5c5   : > { %1819 = vst [vmem:[#allocation2 + $0x160] sm:$0xff] %v1771_v25  ;;  %v1773_v56 = vadd.f32 %v1601_v46, %v1403_v30  ;;  %v2358_v8 = vpop.f32.mrf.mxu0  ;;  %v1444_v30 = vld [vmem:[#allocation2 + $0x150] sm:$0xff] }
 0x5c6   : > { %1820 = vst [vmem:[#allocation2 + $0x128] sm:$0xff] %v1772_v24  ;;  %v1787_v63 = vadd.f32 %v2358_v8, %v1417_v38  ;;  %v1603_v6 = vpop.f32.mrf.mxu1  ;;  %v1419_v38 = vld [vmem:[#allocation2 + $0xb8] sm:$0xff] }
 0x5c7   : > { %1821 = vst [vmem:[#allocation2 + $0x40] sm:$0xff] %v1773_v56  ;;  %v1774_v5 = vadd.f32 %v1603_v6, %v1404_v52  ;;  %v1720_v32 = vpop.f32.mrf.mxu0  ;;  %v1438_v52 = vld [vmem:[#allocation2 + $0x78] sm:$0xff] }
 0x5c8   : > { %1835 = vst [vmem:[#allocation2 + $0xe0] sm:$0xff] %v1787_v63  ;;  %v1781_v50 = vadd.f32 %v1720_v32, %v1411_v57  ;;  %v1605_v22 = vpop.f32.mrf.mxu1  ;;  %v1421_v57 = vld [vmem:[#allocation2 + $0xe8] sm:$0xff]  ;;  %v1422_v32 = vld [vmem:[#allocation2 + $0xf8] sm:$0xff] }
 0x5c9   : > { %1822 = vst [vmem:[#allocation2 + $0x178] sm:$0xff] %v1774_v5  ;;  %v1776_v34 = vadd.f32 %v1605_v22, %v1406_v14  ;;  %v2359_v35 = vpop.f32.mrf.mxu0  ;;  %v1424_v22 = vld [vmem:[#allocation2 + $0x88] sm:$0xff] }
 0x5ca   : > { %1829 = vst [vmem:[#allocation2 + $0x58] sm:$0xff] %v1781_v50  ;;  %v1790_v31 = vadd.f32 %v2359_v35, %v1420_v42  ;;  %v1607_v51 = vpop.f32.mrf.mxu1  ;;  %v1425_v35 = vld [vmem:[#allocation2 + $0xa0] sm:$0xff] }
 0x5cb   : > { %1824 = vst [vmem:[#allocation2 + $0x110] sm:$0xff] %v1776_v34  ;;  %v1777_v59 = vadd.f32 %v1607_v51, %v1407_v40  ;;  %v1723_v60 = vpop.f32.mrf.mxu0  ;;  %v1427_v51 = vld [vmem:[#allocation2 + $0xf0] sm:$0xff] }
 0x5cc   : > { %1838 = vst [vmem:[#allocation2 + $0x168] sm:$0xff] %v1790_v31  ;;  %v1784_v9 = vadd.f32 %v1723_v60, %v1414_v48  ;;  %v1611_v10 = vpop.f32.mrf.mxu1  ;;  %v1428_v60 = vld [vmem:[#allocation2 + $0x140] sm:$0xff] }
 0x5cd   : > { %1825 = vst [vmem:[#allocation2 + $0x90] sm:$0xff] %v1777_v59  ;;  %v1779_v13 = vadd.f32 %v1611_v10, %v1409_v41  ;;  %v2362_v26 = vpop.f32.mrf.mxu0  ;;  %v1430_v10 = vld [vmem:[#allocation2 + $0xc8] sm:$0xff] }
 0x5ce   : > { %1832 = vst [vmem:[#allocation2 + $0x130] sm:$0xff] %v1784_v9  ;;  %v1799_v2 = vadd.f32 %v2362_v26, %v1429_v62  ;;  %v1613_v19 = vpop.f32.mrf.mxu1  ;;  %v1431_v26 = vld [vmem:[#allocation2 + $0x28] sm:$0xff] }
 0x5cf   : > { %1827 = vst [vmem:[#allocation2 + $0x148] sm:$0xff] %v1779_v13  ;;  %v1780_v1 = vadd.f32 %v1613_v19, %v1410_v3  ;;  %v1736_v0 = vpop.f32.mrf.mxu0  ;;  %v1433_v19 = vld [vmem:[#allocation2 + $0xc0] sm:$0xff] }
 0x5d0   : > { %1847 = vst [vmem:[#allocation2 + $0x60] sm:$0xff] %v1799_v2  ;;  %v1793_v17 = vadd.f32 %v1736_v0, %v1423_v27  ;;  %v1615_v45 = vpop.f32.mrf.mxu1  ;;  %v1434_v0 = vld [vmem:[#allocation2 + $0x18] sm:$0xff] }
 0x5d1   : > { %1828 = vst [vmem:[#allocation2 + $0x100] sm:$0xff] %v1780_v1  ;;  %v1782_v43 = vadd.f32 %v1615_v45, %v1412_v20  ;;  %v2363_v29 = vpop.f32.mrf.mxu0  ;;  %v1436_v45 = vld [vmem:[#allocation2 + $0x8] sm:$0xff] }
 0x5d2   : > { %1841 = vst [vmem:[#allocation2 + $0x20] sm:$0xff] %v1793_v17  ;;  %v1802_v44 = vadd.f32 %v2363_v29, %v1432_v4  ;;  %v1617_v61 = vpop.f32.mrf.mxu1  ;;  %v1437_v29 = vld [vmem:[#allocation2] sm:$0xff] }
 0x5d3   : > { %1830 = vst [vmem:[#allocation2 + $0xd8] sm:$0xff] %v1782_v43  ;;  %v1783_v15 = vadd.f32 %v1617_v61, %v1413_v12  ;;  %v1739_v23 = vpop.f32.mrf.mxu0  ;;  %v1439_v61 = vld [vmem:[#allocation2 + $0x50] sm:$0xff] }
 0x5d4   : > { %1850 = vst [vmem:[#allocation2 + $0x38] sm:$0xff] %v1802_v44  ;;  %v1796_v18 = vadd.f32 %v1739_v23, %v1426_v37  ;;  %v1621_v55 = vpop.f32.mrf.mxu1  ;;  %v1440_v23 = vld [vmem:[#allocation2 + $0x68] sm:$0xff] }
 0x5d5   : > { %1831 = vst [vmem:[#allocation2 + $0x80] sm:$0xff] %v1783_v15  ;;  %v1785_v33 = vadd.f32 %v1621_v55, %v1415_v36  ;;  %v2366_v53 = vpop.f32.mrf.mxu0  ;;  %v1442_v55 = vld [vmem:[#allocation2 + $0x30] sm:$0xff] }
 0x5d6   : > { %1844 = vst [vmem:[#allocation2 + $0x170] sm:$0xff] %v1796_v18  ;;  %v1811_v11 = vadd.f32 %v2366_v53, %v1441_v28  ;;  %v1623_v47 = vpop.f32.mrf.mxu1  ;;  %v1443_v53 = vld [vmem:[#allocation2 + $0x158] sm:$0xff] }
 0x5d7   : > { %1833 = vst [vmem:[#allocation2 + $0x138] sm:$0xff] %v1785_v33  ;;  %v1786_v21 = vadd.f32 %v1623_v47, %v1416_v7  ;;  %v1752_v54 = vpop.f32.mrf.mxu0 }
 0x5d8   : > { %1859 = vst [vmem:[#allocation2 + $0x70] sm:$0xff] %v1811_v11  ;;  %v1805_v25 = vadd.f32 %v1752_v54, %v1435_v39  ;;  %v1625_v58 = vpop.f32.mrf.mxu1 }
 0x5d9   : > { %1834 = vst [vmem:[#allocation2 + $0x120] sm:$0xff] %v1786_v21  ;;  %v1788_v24 = vadd.f32 %v1625_v58, %v1418_v16  ;;  %v2367_v46 = vpop.f32.mrf.mxu0 }
 0x5da   : > { %1853 = vst [vmem:[#allocation2 + $0x98] sm:$0xff] %v1805_v25  ;;  %v1814_v56 = vadd.f32 %v2367_v46, %v1444_v30  ;;  %v1627_v8 = vpop.f32.mrf.mxu1 }
 0x5db   : > { %1836 = vst [vmem:[#allocation2 + $0xa8] sm:$0xff] %v1788_v24  ;;  %v1789_v63 = vadd.f32 %v1627_v8, %v1419_v38  ;;  %v1755_v6 = vpop.f32.mrf.mxu0 }
 0x5dc   : > { %1862 = vst [vmem:[#allocation2 + $0x150] sm:$0xff] %v1814_v56  ;;  %v1808_v14 = vadd.f32 %v1755_v6, %v1438_v52  ;;  %v1631_v5 = vpop.f32.mrf.mxu1 }
 0x5dd   : > { %1837 = vst [vmem:[#allocation2 + $0xb8] sm:$0xff] %v1789_v63  ;;  %v1791_v42 = vadd.f32 %v1631_v5, %v1421_v57 }
 0x5de   : > { %1856 = vst [vmem:[#allocation2 + $0x78] sm:$0xff] %v1808_v14  ;;  %v1633_v50 = vpop.f32.mrf.mxu1 }
 0x5df   : > { %1839 = vst [vmem:[#allocation2 + $0xe8] sm:$0xff] %v1791_v42  ;;  %v1792_v40 = vadd.f32 %v1633_v50, %v1422_v32 }
 0x5e0   : > { %v1635_v34 = vpop.f32.mrf.mxu1 }
 0x5e1   : > { %1840 = vst [vmem:[#allocation2 + $0xf8] sm:$0xff] %v1792_v40  ;;  %v1794_v48 = vadd.f32 %v1635_v34, %v1424_v22 }
 0x5e2   : > { %v1637_v31 = vpop.f32.mrf.mxu1 }
 0x5e3   : > { %1842 = vst [vmem:[#allocation2 + $0x88] sm:$0xff] %v1794_v48  ;;  %v1795_v41 = vadd.f32 %v1637_v31, %v1425_v35 }
 0x5e4   : > { %v1641_v59 = vpop.f32.mrf.mxu1 }
 0x5e5   : > { %1843 = vst [vmem:[#allocation2 + $0xa0] sm:$0xff] %v1795_v41  ;;  %v1797_v62 = vadd.f32 %v1641_v59, %v1427_v51 }
 0x5e6   : > { %v1643_v9 = vpop.f32.mrf.mxu1 }
 0x5e7   : > { %1845 = vst [vmem:[#allocation2 + $0xf0] sm:$0xff] %v1797_v62  ;;  %v1798_v3 = vadd.f32 %v1643_v9, %v1428_v60 }
 0x5e8   : > { %v1645_v13 = vpop.f32.mrf.mxu1 }
 0x5e9   : > { %1846 = vst [vmem:[#allocation2 + $0x140] sm:$0xff] %v1798_v3  ;;  %v1800_v27 = vadd.f32 %v1645_v13, %v1430_v10 }
 0x5ea   : > { %v1647_v2 = vpop.f32.mrf.mxu1 }
 0x5eb   : > { %1848 = vst [vmem:[#allocation2 + $0xc8] sm:$0xff] %v1800_v27  ;;  %v1801_v20 = vadd.f32 %v1647_v2, %v1431_v26 }
 0x5ec   : > { %v1651_v1 = vpop.f32.mrf.mxu1 }
 0x5ed   : > { %1849 = vst [vmem:[#allocation2 + $0x28] sm:$0xff] %v1801_v20  ;;  %v1803_v4 = vadd.f32 %v1651_v1, %v1433_v19 }
 0x5ee   : > { %v1653_v17 = vpop.f32.mrf.mxu1 }
 0x5ef   : > { %1851 = vst [vmem:[#allocation2 + $0xc0] sm:$0xff] %v1803_v4  ;;  %v1804_v12 = vadd.f32 %v1653_v17, %v1434_v0 }
 0x5f0   : > { %v1655_v43 = vpop.f32.mrf.mxu1 }
 0x5f1   : > { %1852 = vst [vmem:[#allocation2 + $0x18] sm:$0xff] %v1804_v12  ;;  %v1806_v37 = vadd.f32 %v1655_v43, %v1436_v45 }
 0x5f2   : > { %v1657_v44 = vpop.f32.mrf.mxu1 }
 0x5f3   : > { %1854 = vst [vmem:[#allocation2 + $0x8] sm:$0xff] %v1806_v37  ;;  %v1807_v36 = vadd.f32 %v1657_v44, %v1437_v29 }
 0x5f4   : > { %v1661_v15 = vpop.f32.mrf.mxu1 }
 0x5f5   : > { %1855 = vst [vmem:[#allocation2] sm:$0xff] %v1807_v36  ;;  %v1809_v28 = vadd.f32 %v1661_v15, %v1439_v61 }
 0x5f6   : > { %v1663_v18 = vpop.f32.mrf.mxu1 }
 0x5f7   : > { %1857 = vst [vmem:[#allocation2 + $0x50] sm:$0xff] %v1809_v28  ;;  %v1810_v7 = vadd.f32 %v1663_v18, %v1440_v23 }
 0x5f8   : > { %v1665_v33 = vpop.f32.mrf.mxu1 }
 0x5f9   : > { %1858 = vst [vmem:[#allocation2 + $0x68] sm:$0xff] %v1810_v7  ;;  %v1812_v39 = vadd.f32 %v1665_v33, %v1442_v55  ;;  %1866 = sbr.rel (%p2232_p1) target bundleno = 1564 (0x61c), region = 44 }
 0x5fa   : > { %v1667_v11 = vpop.f32.mrf.mxu1 }
 0x5fb   : > { %1860 = vst [vmem:[#allocation2 + $0x30] sm:$0xff] %v1812_v39  ;;  %v1813_v47 = vadd.f32 %v1667_v11, %v1443_v53 }
 0x5fd   : > { %1861 = vst [vmem:[#allocation2 + $0x158] sm:$0xff] %v1813_v47 }
 0x5fe   : > { %v1867_v16 = vld [vmem:[#allocation2 + $0xb0] sm:$0xff]  ;;  %v1915_v21 = vld [vmem:[%s3475_s3] sm:$0x7]  ;;  %v1919_v54 = vsub.s32 0, %v3102_v49  ;;  %v1923_v25 = vsub.s32 1, %v3102_v49  ;;  %v1927_v38 = vsub.s32 2, %v3102_v49 }
 0x5ff   : > { %v1868_v30 = vld [vmem:[#allocation2 + $0xd0] sm:$0xff]  ;;  %v1870_v24 = vld [vmem:[#allocation2 + $0x48] sm:$0xff]  ;;  %v1871_v46 = vld [vmem:[#allocation2 + $0x160] sm:$0xff] }
 0x600   : > { %v1869_v58 = vld [vmem:[#allocation2 + $0x10] sm:$0xff]  ;;  %v3308_v52 = vrot.slane %v1915_v21, %v1919_v54  ;;  %v3310_v56 = vrot.slane %v1915_v21, %v1923_v25  ;;  %v1872_v8 = vld [vmem:[#allocation2 + $0x128] sm:$0xff]  ;;  %v1873_v57 = vld [vmem:[#allocation2 + $0x40] sm:$0xff]  ;;  %v3312_v6 = vrot.slane %v1915_v21, %v1927_v38 }
 0x601   : > { %v1874_v63 = vld [vmem:[#allocation2 + $0x178] sm:$0xff]  ;;  %v1875_v14 = vld [vmem:[#allocation2 + $0x108] sm:$0xff]  ;;  %v1876_v5 = vld [vmem:[#allocation2 + $0x110] sm:$0xff] }
 0x602   : > { %v1877_v32 = vld [vmem:[#allocation2 + $0x90] sm:$0xff]  ;;  %v1932_v42 = vadd.f32 %v3308_v52, %v1867_v16  ;;  %v1933_v49 = vadd.f32 %v3310_v56, %v1868_v30  ;;  %v1935_v50 = vadd.f32 %v3308_v52, %v1870_v24  ;;  %v1936_v22 = vadd.f32 %v3310_v56, %v1871_v46  ;;  %v1878_v40 = vld [vmem:[#allocation2 + $0x118] sm:$0xff]  ;;  %v1879_v34 = vld [vmem:[#allocation2 + $0x148] sm:$0xff] }
 0x603   : > { %v1880_v35 = vld [vmem:[#allocation2 + $0x100] sm:$0xff]  ;;  %v1934_v48 = vadd.f32 %v3312_v6, %v1869_v58  ;;  %v1937_v31 = vadd.f32 %v3312_v6, %v1872_v8  ;;  %v1938_v51 = vadd.f32 %v3308_v52, %v1873_v57  ;;  %v1939_v41 = vadd.f32 %v3310_v56, %v1874_v63  ;;  %v1881_v59 = vld [vmem:[#allocation2 + $0x58] sm:$0xff]  ;;  %v1884_v26 = vld [vmem:[#allocation2 + $0x130] sm:$0xff] }
 0x604   : > { %v1882_v60 = vld [vmem:[#allocation2 + $0xd8] sm:$0xff]  ;;  %v1883_v62 = vld [vmem:[#allocation2 + $0x80] sm:$0xff]  ;;  %1980 = vst [vmem:[%s2825_s21] sm:$0xff] %v1932_v42  ;;  %1981 = vst [vmem:[%s2825_s21 + $0x8] sm:$0xff] %v1933_v49  ;;  %v1940_v9 = vadd.f32 %v3312_v6, %v1875_v14  ;;  %v1941_v10 = vadd.f32 %v3308_v52, %v1876_v5  ;;  %v1942_v3 = vadd.f32 %v3310_v56, %v1877_v32 }
 0x605   : > { %1983 = vst [vmem:[%s2825_s21 + $0x18] sm:$0xff] %v1935_v50  ;;  %1984 = vst [vmem:[%s2825_s21 + $0x20] sm:$0xff] %v1936_v22  ;;  %v1943_v13 = vadd.f32 %v3312_v6, %v1878_v40  ;;  %v1885_v27 = vld [vmem:[#allocation2 + $0x138] sm:$0xff]  ;;  %v1886_v2 = vld [vmem:[#allocation2 + $0x120] sm:$0xff]  ;;  %v1944_v19 = vadd.f32 %v3308_v52, %v1879_v34  ;;  %v1945_v20 = vadd.f32 %v3310_v56, %v1880_v35 }
 0x606   : > { %1982 = vst [vmem:[%s2825_s21 + $0x10] sm:$0xff] %v1934_v48  ;;  %1985 = vst [vmem:[%s2825_s21 + $0x28] sm:$0xff] %v1937_v31  ;;  %v1946_v1 = vadd.f32 %v3312_v6, %v1881_v59  ;;  %v1947_v0 = vadd.f32 %v3308_v52, %v1882_v60  ;;  %v1887_v4 = vld [vmem:[#allocation2 + $0xe0] sm:$0xff]  ;;  %v1888_v17 = vld [vmem:[#allocation2 + $0xa8] sm:$0xff]  ;;  %v1948_v12 = vadd.f32 %v3310_v56, %v1883_v62 }
 0x607   : > { %1986 = vst [vmem:[%s2825_s21 + $0x30] sm:$0xff] %v1938_v51  ;;  %1987 = vst [vmem:[%s2825_s21 + $0x38] sm:$0xff] %v1939_v41  ;;  %v1889_v45 = vld [vmem:[#allocation2 + $0xb8] sm:$0xff]  ;;  %v1949_v43 = vadd.f32 %v3312_v6, %v1884_v26  ;;  %v1950_v29 = vadd.f32 %v3308_v52, %v1885_v27  ;;  %v1951_v37 = vadd.f32 %v3310_v56, %v1886_v2  ;;  %v1890_v44 = vld [vmem:[#allocation2 + $0x168] sm:$0xff] }
 0x608   : > { %1988 = vst [vmem:[%s2825_s21 + $0x40] sm:$0xff] %v1940_v9  ;;  %1989 = vst [vmem:[%s2825_s21 + $0x48] sm:$0xff] %v1941_v10  ;;  %v1891_v61 = vld [vmem:[#allocation2 + $0xe8] sm:$0xff]  ;;  %v1892_v36 = vld [vmem:[#allocation2 + $0xf8] sm:$0xff]  ;;  %v1952_v15 = vadd.f32 %v3312_v6, %v1887_v4  ;;  %v1953_v23 = vadd.f32 %v3308_v52, %v1888_v17  ;;  %v1954_v28 = vadd.f32 %v3310_v56, %v1889_v45 }
 0x609   : > { %1990 = vst [vmem:[%s2825_s21 + $0x50] sm:$0xff] %v1942_v3  ;;  %1991 = vst [vmem:[%s2825_s21 + $0x58] sm:$0xff] %v1943_v13  ;;  %v1955_v18 = vadd.f32 %v3312_v6, %v1890_v44  ;;  %v1893_v55 = vld [vmem:[#allocation2 + $0x20] sm:$0xff]  ;;  %v1894_v7 = vld [vmem:[#allocation2 + $0x88] sm:$0xff]  ;;  %v1956_v53 = vadd.f32 %v3308_v52, %v1891_v61  ;;  %v1957_v39 = vadd.f32 %v3310_v56, %v1892_v36 }
 0x60a   : > { %1992 = vst [vmem:[%s2825_s21 + $0x60] sm:$0xff] %v1944_v19  ;;  %1993 = vst [vmem:[%s2825_s21 + $0x68] sm:$0xff] %v1945_v20  ;;  %v1895_v33 = vld [vmem:[#allocation2 + $0xa0] sm:$0xff]  ;;  %v1958_v11 = vadd.f32 %v3312_v6, %v1893_v55  ;;  %v1959_v47 = vadd.f32 %v3308_v52, %v1894_v7  ;;  %v1896_v16 = vld [vmem:[#allocation2 + $0x170] sm:$0xff] }
 0x60b   : > { %1994 = vst [vmem:[%s2825_s21 + $0x70] sm:$0xff] %v1946_v1  ;;  %1995 = vst [vmem:[%s2825_s21 + $0x78] sm:$0xff] %v1947_v0  ;;  %v1897_v21 = vld [vmem:[#allocation2 + $0xf0] sm:$0xff]  ;;  %v1898_v54 = vld [vmem:[#allocation2 + $0x140] sm:$0xff]  ;;  %v1960_v30 = vadd.f32 %v3310_v56, %v1895_v33  ;;  %v1961_v25 = vadd.f32 %v3312_v6, %v1896_v16 }
 0x60c   : > { %1996 = vst [vmem:[%s2825_s21 + $0x80] sm:$0xff] %v1948_v12  ;;  %1997 = vst [vmem:[%s2825_s21 + $0x88] sm:$0xff] %v1949_v43  ;;  %v1962_v58 = vadd.f32 %v3308_v52, %v1897_v21  ;;  %v1963_v38 = vadd.f32 %v3310_v56, %v1898_v54  ;;  %v1899_v24 = vld [vmem:[#allocation2 + $0x60] sm:$0xff]  ;;  %v1900_v46 = vld [vmem:[#allocation2 + $0xc8] sm:$0xff] }
 0x60d   : > { %1998 = vst [vmem:[%s2825_s21 + $0x90] sm:$0xff] %v1950_v29  ;;  %1999 = vst [vmem:[%s2825_s21 + $0x98] sm:$0xff] %v1951_v37  ;;  %v1901_v8 = vld [vmem:[#allocation2 + $0x28] sm:$0xff]  ;;  %v1964_v57 = vadd.f32 %v3312_v6, %v1899_v24  ;;  %v1965_v63 = vadd.f32 %v3308_v52, %v1900_v46  ;;  %v1902_v5 = vld [vmem:[#allocation2 + $0x38] sm:$0xff] }
 0x60e   : > { %2000 = vst [vmem:[%s2825_s21 + $0xa0] sm:$0xff] %v1952_v15  ;;  %2001 = vst [vmem:[%s2825_s21 + $0xa8] sm:$0xff] %v1953_v23  ;;  %v1966_v14 = vadd.f32 %v3310_v56, %v1901_v8  ;;  %v1903_v32 = vld [vmem:[#allocation2 + $0xc0] sm:$0xff]  ;;  %v1904_v42 = vld [vmem:[#allocation2 + $0x18] sm:$0xff]  ;;  %v1967_v49 = vadd.f32 %v3312_v6, %v1902_v5 }
 0x60f   : > { %2002 = vst [vmem:[%s2825_s21 + $0xb0] sm:$0xff] %v1954_v28  ;;  %2003 = vst [vmem:[%s2825_s21 + $0xb8] sm:$0xff] %v1955_v18  ;;  %v1968_v50 = vadd.f32 %v3308_v52, %v1903_v32  ;;  %v1969_v22 = vadd.f32 %v3310_v56, %v1904_v42  ;;  %v1905_v40 = vld [vmem:[#allocation2 + $0x98] sm:$0xff]  ;;  %v1906_v34 = vld [vmem:[#allocation2 + $0x8] sm:$0xff] }
 0x610   : > { %2004 = vst [vmem:[%s2825_s21 + $0xc0] sm:$0xff] %v1956_v53  ;;  %2005 = vst [vmem:[%s2825_s21 + $0xc8] sm:$0xff] %v1957_v39  ;;  %v1907_v35 = vld [vmem:[#allocation2] sm:$0xff]  ;;  %v1970_v48 = vadd.f32 %v3312_v6, %v1905_v40  ;;  %v1971_v31 = vadd.f32 %v3308_v52, %v1906_v34  ;;  %v1908_v41 = vld [vmem:[#allocation2 + $0x78] sm:$0xff] }
 0x611   : > { %2006 = vst [vmem:[%s2825_s21 + $0xd0] sm:$0xff] %v1958_v11  ;;  %2007 = vst [vmem:[%s2825_s21 + $0xd8] sm:$0xff] %v1959_v47  ;;  %v1972_v51 = vadd.f32 %v3310_v56, %v1907_v35  ;;  %v1909_v59 = vld [vmem:[#allocation2 + $0x50] sm:$0xff]  ;;  %v1910_v60 = vld [vmem:[#allocation2 + $0x68] sm:$0xff]  ;;  %v1973_v62 = vadd.f32 %v3312_v6, %v1908_v41 }
 0x612   : > { %2008 = vst [vmem:[%s2825_s21 + $0xe0] sm:$0xff] %v1960_v30  ;;  %2009 = vst [vmem:[%s2825_s21 + $0xe8] sm:$0xff] %v1961_v25  ;;  %v1974_v9 = vadd.f32 %v3308_v52, %v1909_v59  ;;  %v1975_v10 = vadd.f32 %v3310_v56, %v1910_v60  ;;  %v1911_v3 = vld [vmem:[#allocation2 + $0x70] sm:$0xff]  ;;  %v1913_v26 = vld [vmem:[#allocation2 + $0x158] sm:$0xff] }
 0x613   : > { %2010 = vst [vmem:[%s2825_s21 + $0xf0] sm:$0xff] %v1962_v58  ;;  %2011 = vst [vmem:[%s2825_s21 + $0xf8] sm:$0xff] %v1963_v38  ;;  %v1912_v13 = vld [vmem:[#allocation2 + $0x30] sm:$0xff]  ;;  %v1976_v27 = vadd.f32 %v3312_v6, %v1911_v3  ;;  %v1978_v19 = vadd.f32 %v3310_v56, %v1913_v26 }
 0x614   : > { %2012 = vst [vmem:[%s2825_s21 + $0x100] sm:$0xff] %v1964_v57  ;;  %2013 = vst [vmem:[%s2825_s21 + $0x108] sm:$0xff] %v1965_v63  ;;  %v1977_v2 = vadd.f32 %v3308_v52, %v1912_v13  ;;  %v1914_v20 = vld [vmem:[#allocation2 + $0x150] sm:$0xff] }
 0x615   : > { %2014 = vst [vmem:[%s2825_s21 + $0x110] sm:$0xff] %v1966_v14  ;;  %2015 = vst [vmem:[%s2825_s21 + $0x118] sm:$0xff] %v1967_v49  ;;  %v1979_v1 = vadd.f32 %v3312_v6, %v1914_v20 }
 0x616   : > { %2016 = vst [vmem:[%s2825_s21 + $0x120] sm:$0xff] %v1968_v50  ;;  %2017 = vst [vmem:[%s2825_s21 + $0x128] sm:$0xff] %v1969_v22 }
 0x617   : > { %2018 = vst [vmem:[%s2825_s21 + $0x130] sm:$0xff] %v1970_v48  ;;  %2019 = vst [vmem:[%s2825_s21 + $0x138] sm:$0xff] %v1971_v31 }
 0x618   : > { %2020 = vst [vmem:[%s2825_s21 + $0x140] sm:$0xff] %v1972_v51  ;;  %2021 = vst [vmem:[%s2825_s21 + $0x148] sm:$0xff] %v1973_v62 }
 0x619   : > { %2022 = vst [vmem:[%s2825_s21 + $0x150] sm:$0xff] %v1974_v9  ;;  %2023 = vst [vmem:[%s2825_s21 + $0x158] sm:$0xff] %v1975_v10 }
 0x61a   : > { %2024 = vst [vmem:[%s2825_s21 + $0x160] sm:$0xff] %v1976_v27  ;;  %2025 = vst [vmem:[%s2825_s21 + $0x168] sm:$0xff] %v1977_v2 }
 0x61b   : > { %2026 = vst [vmem:[%s2825_s21 + $0x170] sm:$0xff] %v1978_v19  ;;  %2027 = vst [vmem:[%s2825_s21 + $0x178] sm:$0xff] %v1979_v1 }
 0x61c PF: > { %s2380_s18 = smul.u32 6144, %s2689_s19  ;;  %s2042_s7 = sshll.u32 %s2825_s21, 4  ;;  %s3417_s7 = int_to_ptr.vmem [resolvable:$true] %s2042_s7 }
 0x61d   : > { %s3490_s11 = sand.u32 1, %s2677_s16   ;;  %s2609_s13 = scalar_lea.vmem %s3417_s7, 6144 }
 0x61e   : > { %s3415_s10 = scalar_lea.hbm %s3476_s4, %s2380_s18  ;;  %s3421_s12 = scalar_lea.sflag [#allocation4], %s3490_s11 }
 0x61f   : > { %p2610_p2 = scmp.ne.s32.totalorder %s3417_s7, %s2609_s13  ;;  %s2706_s19 = smov [#allocation3]  }
 0x620   : > { %s2613_s21 = sshll.u32 %s2706_s19, 4  ;;  %s2614_s21 = int_to_ptr.vmem [resolvable:$false] %s2613_s21 }
 0x621   : > { %p2611_p4 = pnand %p2610_p2, %p2783_p3  ;;  %s2615_s14 = scalar_lea.vmem %s2614_s21, 12288 }
 0x622   : > { %p2616_p6 = scmp.lt.s32.totalorder %s3417_s7, %s2614_s21  ;;  %p2617_p7 = scmp.lt.s32.totalorder %s2615_s14, %s2609_s13 }
 0x623   : > { %p2612_p5 = pneg %p2611_p4 }
 0x624   : > { %p2618_p8 = por %p2617_p7, %p2616_p6 }
 0x626   : > { %p2619_p10 = pnand %p2618_p8, %p2612_p5 }
 0x628   : > { %2622 = shalt.err (!%p2619_p10)
}
 0x629   : > { %s2623_s23 = scalar_lea.hbm %s3415_s10, 6144  ;;  %s2627_s30 = scalar_lea.hbm %s3476_s4, 12288 }
 0x62a   : > { %p2624_p11 = scmp.ne.s32.totalorder %s3415_s10, %s2623_s23  ;;  %p2628_p0 = scmp.lt.s32.totalorder %s3415_s10, %s3476_s4 }
 0x62b   : > { %p2629_p1 = scmp.lt.s32.totalorder %s2627_s30, %s2623_s23 }
 0x62c   : > { %p2625_p12 = pnand %p2624_p11, %p2783_p3 }
 0x62d   : > { %p2630_p2 = por %p2629_p1, %p2628_p0 }
 0x62e   : > { %p2626_p13 = pneg %p2625_p12 }
 0x630   : > { %p2631_p4 = pnand %p2630_p2, %p2626_p13 }
 0x632   : > { %2634 = shalt.err (!%p2631_p4)
}
 0x633   : > { %s2707_s6 = smov 384   ;;  %s2708_s18 = smov 24  }
 0x634   : > { %2381 = dma.vmem_to_hbm [thread:$0]  (%p2783_p3), %s3417_s7, 6144, %s3415_s10, %s3421_s12, %s2707_s6, %s2707_s6, %s2708_s18  }
 0x635 PF: > { %p2387_p5 = scmp.ge.s32.totalorder %s2701_s22, 2  ;;  %s2057_s8 = sand.u32 1, %s2673_s15  }
 0x636   : > { %s2058_s9 = scalar_lea.sflag [#allocation4], %s2057_s8 }
 0x637   : > { %p2384_p6 = pnand %p2387_p5, %p2793_p9 }
 0x639   : > { %p2385_p7 = pneg %p2384_p6 }
 0x63b   : > { %2668 = dma.done.wait (%p2385_p7), %s2058_s9, 6144  }
 0x63c   : > { %2670 = vsyncadd (%p2385_p7), %s2058_s9, 4294961152  ;;  %s17_s22 = sadd.s32 1, %s2701_s22   ;;  %s3491_s19 = sld [smem:[#allocation6_spill]] }
 0x63d   : > { %p14_p8 = scmp.ge.s32.totalorder %s17_s22, 14   ;;  %s3492_s27 = sld [smem:[#allocation7_spill]] }
 0x63e   : > { %s3493_s21 = sld [smem:[#allocation8_spill]]  ;;  %s3494_s15 = smov %s2677_s16 }
 0x63f   : > { %s3495_s16 = smov %s2681_s17  ;;  %s3496_s17 = smov %s2801_s5 }
 0x640   : > { %s3497_s18 = smov %s2693_s20  ;;  %16 = sbr.rel (!%p14_p8) target bundleno = 5 (0x5), region = 85 }
 0x643   : > { %s3498_s20 = smov %s3492_s27 }
 0x645   :  { %2063 = vsyncpa [#allocation4], 1 }
 0x646   :  { %2065 = vsyncpa [#allocation4 + $0x1], 1 }

</bundles_post_ra>
